<compile_context>
chip_gen: v5e
topology: v5e:2x2
jax: 0.10.0
libtpu: 0.0.40
codegen_flags: <defaults>
</compile_context>

<pallas_src>
import functools

import jax
import jax.numpy as jnp
from jax import lax
from jax.experimental import pallas as pl
from jax.experimental.pallas import tpu as pltpu

BN_EPS = 1e-5
# bf16 operands for the conv matmuls (f32 accumulation via
# preferred_element_type): ~3-4x MXU throughput on v6e/v7x, bf16-native on v5e
# too.  Set to jnp.float32 for bit-exact parity with an f32 reference.
MXU_DTYPE = jnp.bfloat16
LANE = 128
SUBLANE = 8
TAIL = 8  # zero rows appended after the slab so the kh=1,2 shifted reads of
          # the last image never run past the allocation.


def _round_up(v, m):
    return (v + m - 1) // m * m


# ----------------------------------------------------------------------------
# In-kernel helpers
# ----------------------------------------------------------------------------
def _bn_relu(y, row_ok, fold_ref, unfold_ref, gamma_ref, beta_ref):
    """Training-mode BatchNorm + ReLU on a (rows, OW*C) lane-dense slab.

    `fold` already contains the 1/count normalisation, so one (2,L)@(L,C)
    matmul turns the masked column-sum / sum-of-squares into per-channel
    mean / E[x^2]; a second (2,C)@(C,L) matmul broadcasts the fused
    scale/shift back to lanes.  Invalid (boundary/pad) rows are excluded from
    the statistics via `row_ok` but still receive finite normalised values.
    """
    ym = jnp.where(row_ok, y, 0.0)
    stats = jnp.concatenate(
        [jnp.sum(ym, axis=0, keepdims=True),
         jnp.sum(ym * ym, axis=0, keepdims=True)], axis=0)           # (2, L)
    folded = jnp.dot(stats, fold_ref[...],
                     precision=lax.Precision.HIGHEST,
                     preferred_element_type=jnp.float32)             # (2, C)
    mean = folded[0:1, :]
    var = folded[1:2, :] - mean * mean                               # biased
    scale = lax.rsqrt(var + BN_EPS) * gamma_ref[...]                 # (1, C)
    shift = beta_ref[...] - mean * scale                             # (1, C)
    ss = jnp.concatenate([scale, shift], axis=0)                     # (2, C)
    ssl = jnp.dot(ss, unfold_ref[...],
                  precision=lax.Precision.HIGHEST,
                  preferred_element_type=jnp.float32)                # (2, L)
    return jnp.maximum(y * ssl[0:1, :] + ssl[1:2, :], 0.0)


def _downblock_kernel(x_ref, rowh_ref, w1_ref, w2_ref,
                      f1_ref, u1_ref, g1_ref, bt1_ref,
                      f2_ref, u2_ref, g2_ref, bt2_ref,
                      o_ref, acc1_ref, *, oh1, oh2):
    m = o_ref.shape[0]                       # N*HP rows (multiple of 8)
    h = rowh_ref[...]                        # (m, 1) row-within-image index

    # ---- layer 1: 3x3 conv = 3 slab-wide MXU matmuls (one per kernel row).
    # Rows are in "same-origin" layout, so the kh shift is a single uniform
    # sublane offset for the whole batch (no per-image loop).
    y = jnp.dot(x_ref[0:m, :].astype(MXU_DTYPE), w1_ref[0],
                preferred_element_type=jnp.float32)
    for kh in range(1, 3):
        y = y + jnp.dot(x_ref[kh:kh + m, :].astype(MXU_DTYPE), w1_ref[kh],
                        preferred_element_type=jnp.float32)
    acc1_ref[0:m, :] = _bn_relu(y, h < oh1, f1_ref, u1_ref, g1_ref, bt1_ref)
    acc1_ref[m:, :] = jnp.zeros(
        (acc1_ref.shape[0] - m, acc1_ref.shape[1]), jnp.float32)

    # ---- layer 2: same structure, reading the VMEM-resident activation. ----
    y = jnp.dot(acc1_ref[0:m, :].astype(MXU_DTYPE), w2_ref[0],
                preferred_element_type=jnp.float32)
    for kh in range(1, 3):
        y = y + jnp.dot(acc1_ref[kh:kh + m, :].astype(MXU_DTYPE), w2_ref[kh],
                        preferred_element_type=jnp.float32)
    o_ref[...] = _bn_relu(y, h < oh2, f2_ref, u2_ref, g2_ref, bt2_ref)


# ----------------------------------------------------------------------------
# Wrapper-side (tiny, one-time) parameter re-layouts
# ----------------------------------------------------------------------------
def _banded_conv_weight(w, w_in, w_out, rows_pad, cols_pad):
    """(Cout, Cin, 3, 3) conv weight -> (3, rows_pad, cols_pad) banded matrices
    B[kh] such that  y[row, ow*Cout + co] = sum_kh x[row + kh, :] @ B[kh]
    reproduces a valid 3x3 conv on a (rows, W*Cin) lane-dense layout.
    Pad rows/cols are zero so padded lanes stay exactly zero.
    # TODO(synk): at production W*Cin switch to a channel-contraction
    # (K = 9*Cin) formulation -- the band wastes ~W/3x FLOPs and VMEM there.
    """
    cout, cin, ksz, _ = w.shape
    wt = jnp.transpose(w, (2, 3, 1, 0)).astype(jnp.float32)   # (kh, kw, Ci, Co)
    sel = (jnp.arange(w_in)[None, :, None]
           == (jnp.arange(w_out)[None, None, :] + jnp.arange(ksz)[:, None, None]))
    sel = sel.astype(jnp.float32)                             # (kw, w_in, w_out)
    b = jnp.einsum('kio,hkcd->hicod', sel, wt)                # (kh, w_in, Ci, w_out, Co)
    b = b.reshape(ksz, w_in * cin, w_out * cout)
    b = jnp.pad(b, ((0, 0), (0, rows_pad - w_in * cin),
                    (0, cols_pad - w_out * cout)))
    return b.astype(MXU_DTYPE)


def _fold_unfold(ow, ch, lanes_pad, ch_pad, count):
    """Selectors between lane index (ow*C + c) and channel c.  `fold` sums the
    OW positions of each channel and divides by `count`; `unfold` broadcasts a
    per-channel value back to its lanes.
    # TODO(synk): at production OW*C replace with roll-based reduce/broadcast
    # so no (L, C) selector matrices need to live in VMEM.
    """
    lane = jnp.arange(lanes_pad)
    c = jnp.arange(ch_pad)
    hit = ((lane[:, None] % ch) == c[None, :]) & (lane[:, None] < ow * ch)
    fold = jnp.where(hit, 1.0 / count, 0.0).astype(jnp.float32)   # (L, C)
    unfold = jnp.where(hit, 1.0, 0.0).astype(jnp.float32).T       # (C, L)
    return fold, unfold


@jax.jit
def downblock_forward(x, params):
    n, cin, h, w = x.shape
    c1 = params["w1"].shape[0]
    c2 = params["w2"].shape[0]
    oh1, ow1 = h - 2, w - 2
    oh2, ow2 = oh1 - 2, ow1 - 2

    hp = _round_up(h, SUBLANE)              # rows per image (same-origin)
    m = n * hp
    wc1 = _round_up(w * cin, LANE)
    wc2 = _round_up(ow1 * c1, LANE)
    wc3 = _round_up(ow2 * c2, LANE)
    cp1 = _round_up(c1, LANE)
    cp2 = _round_up(c2, LANE)

    # NCHW -> lane-dense rows: row = n*HP + h, lane = w*Cin + ci, zero padded.
    # TODO(synk): in a full UNet keep this folded-NHWC layout across blocks
    # (and emit the consumer's layout from out_specs) instead of paying an HBM
    # transpose on each side of every block.
    x_rows = jnp.transpose(x, (0, 2, 3, 1)).reshape(n, h, w * cin)
    x_rows = jnp.pad(x_rows, ((0, 0), (0, hp - h), (0, wc1 - w * cin)))
    x_slab = jnp.concatenate(
        [x_rows.reshape(m, wc1), jnp.zeros((TAIL, wc1), x_rows.dtype)],
        axis=0).astype(jnp.float32)

    row_h = jnp.tile(jnp.arange(hp, dtype=jnp.int32), n).reshape(m, 1)

    w1b = _banded_conv_weight(params["w1"], w, ow1, wc1, wc2)
    w2b = _banded_conv_weight(params["w2"], ow1, ow2, wc2, wc3)
    # NOTE: conv biases are intentionally NOT passed -- training-mode BN
    # subtracts the batch mean immediately afterwards, so a per-channel
    # constant bias cancels exactly (variance unchanged).

    f1, u1 = _fold_unfold(ow1, c1, wc2, cp1, n * oh1 * ow1)
    f2, u2 = _fold_unfold(ow2, c2, wc3, cp2, n * oh2 * ow2)
    g1 = jnp.zeros((1, cp1), jnp.float32).at[0, :c1].set(params["g1"])
    g2 = jnp.zeros((1, cp2), jnp.float32).at[0, :c2].set(params["g2"])
    bt1 = jnp.zeros((1, cp1), jnp.float32).at[0, :c1].set(params["beta1"])
    bt2 = jnp.zeros((1, cp2), jnp.float32).at[0, :c2].set(params["beta2"])

    args = (x_slab, row_h, w1b, w2b, f1, u1, g1, bt1, f2, u2, g2, bt2)
    flops = 2 * 3 * m * (wc1 * wc2 + wc2 * wc3) + 8 * (wc2 * cp1 + wc3 * cp2)
    bytes_accessed = (sum(int(a.size) * a.dtype.itemsize for a in args)
                      + m * wc3 * 4)

    vmem = pl.BlockSpec(memory_space=pltpu.MemorySpace.VMEM)
    kernel = functools.partial(_downblock_kernel, oh1=oh1, oh2=oh2)
    # TODO(synk): at production UNet sizes (and v7x's 64 MiB VMEM) this single
    # block must become a grid tiled over batch/rows with a 2-row halo
    # ("parallel" on the independent axis), a two-pass BN accumulated in VMEM
    # scratch across grid steps, and 128-aligned tiles sized for v5e's MXU.
    out = pl.pallas_call(
        kernel,
        out_shape=jax.ShapeDtypeStruct((m, wc3), jnp.float32),
        in_specs=[vmem] * len(args),
        out_specs=vmem,
        scratch_shapes=[pltpu.VMEM((m + TAIL, wc2), jnp.float32)],
        compiler_params=pltpu.CompilerParams(
            vmem_limit_bytes=32 * 1024 * 1024),
        cost_estimate=pl.CostEstimate(flops=flops,
                                      transcendentals=cp1 + cp2,
                                      bytes_accessed=bytes_accessed),
    )(*args)

    # (N*HP, WC3) slab -> NCHW, dropping masked boundary rows / pad lanes.
    out = out.reshape(n, hp, wc3)[:, :oh2, :ow2 * c2].reshape(n, oh2, ow2, c2)
    return jnp.transpose(out, (0, 3, 1, 2))


# ----------------------------------------------------------------------------
# Pure-JAX references (no Pallas) for correctness checks.
# ----------------------------------------------------------------------------
def _ref_layer(x, w, b, gamma, beta, dot_dtype):
    y = lax.conv_general_dilated(
        x.astype(dot_dtype), w.astype(dot_dtype),
        window_strides=(1, 1), padding="VALID",
        dimension_numbers=("NCHW", "OIHW", "NCHW"),
        preferred_element_type=jnp.float32,
        precision=lax.Precision.HIGHEST)
    y = y + b.reshape(1, -1, 1, 1)
    mean = jnp.mean(y, axis=(0, 2, 3), keepdims=True)
    var = jnp.mean((y - mean) ** 2, axis=(0, 2, 3), keepdims=True)
    y = (y - mean) * lax.rsqrt(var + BN_EPS)
    y = y * gamma.reshape(1, -1, 1, 1) + beta.reshape(1, -1, 1, 1)
    return jnp.maximum(y, 0.0)


def _ref_forward(x, p, dot_dtype=jnp.float32):
    out = _ref_layer(x, p["w1"], p["b1"], p["g1"], p["beta1"], dot_dtype)
    return _ref_layer(out, p["w2"], p["b2"], p["g2"], p["beta2"], dot_dtype)


# ----------------------------------------------------------------------------
if __name__ == "__main__":
    key = jax.random.PRNGKey(0)
    N, IN_CH, OUT_CH, H, W = 2, 4, 8, 16, 16

    k_x, k_w1, k_b1, k_w2, k_b2 = jax.random.split(key, 5)
    x = jax.random.normal(k_x, (N, IN_CH, H, W), dtype=jnp.float32)

    # Deterministic parameter init (shapes from nn.Conv2d / nn.BatchNorm2d).
    fan1 = IN_CH * 9
    fan2 = OUT_CH * 9
    params = {
        "w1": jax.random.uniform(k_w1, (OUT_CH, IN_CH, 3, 3), jnp.float32,
                                 -1.0 / fan1 ** 0.5, 1.0 / fan1 ** 0.5),
        "b1": jax.random.uniform(k_b1, (OUT_CH,), jnp.float32,
                                 -1.0 / fan1 ** 0.5, 1.0 / fan1 ** 0.5),
        "g1": jnp.ones((OUT_CH,), jnp.float32),
        "beta1": jnp.zeros((OUT_CH,), jnp.float32),
        "w2": jax.random.uniform(k_w2, (OUT_CH, OUT_CH, 3, 3), jnp.float32,
                                 -1.0 / fan2 ** 0.5, 1.0 / fan2 ** 0.5),
        "b2": jax.random.uniform(k_b2, (OUT_CH,), jnp.float32,
                                 -1.0 / fan2 ** 0.5, 1.0 / fan2 ** 0.5),
        "g2": jnp.ones((OUT_CH,), jnp.float32),
        "beta2": jnp.zeros((OUT_CH,), jnp.float32),
    }

    out = jax.block_until_ready(downblock_forward(x, params))
    assert out.shape == (N, OUT_CH, H - 4, W - 4), out.shape

    # Structural check: reference convs use the same bf16-operand / f32-accum
    # policy as the kernel's MXU dots -> catches layout / algorithm bugs.
    ref_match = jax.block_until_ready(_ref_forward(x, params, MXU_DTYPE))
    err_struct = float(jnp.max(jnp.abs(out - ref_match)))
    assert err_struct < 2e-2, f"structural mismatch: {err_struct}"

    # Accuracy check against the full-f32 PyTorch-equivalent reference; the
    # looser bound reflects the bf16 MXU operands (per the perf review).
    ref_f32 = jax.block_until_ready(_ref_forward(x, params, jnp.float32))
    err_f32 = float(jnp.max(jnp.abs(out - ref_f32)))
    assert err_f32 < 1e-1, f"f32 deviation too large: {err_f32}"

    print("KERNEL_OK")
</pallas_src>

<mosaic_0001>
module attributes {stable_mosaic.version = 11 : i64} {
  func.func @_downblock_kernel(%arg0: memref<40x128xf32, #tpu.memory_space<vmem>>, %arg1: memref<32x1xi32, #tpu.memory_space<vmem>>, %arg2: memref<3x128x128xbf16, #tpu.memory_space<vmem>>, %arg3: memref<3x128x128xbf16, #tpu.memory_space<vmem>>, %arg4: memref<128x128xf32, #tpu.memory_space<vmem>>, %arg5: memref<128x128xf32, #tpu.memory_space<vmem>>, %arg6: memref<1x128xf32, #tpu.memory_space<vmem>>, %arg7: memref<1x128xf32, #tpu.memory_space<vmem>>, %arg8: memref<128x128xf32, #tpu.memory_space<vmem>>, %arg9: memref<128x128xf32, #tpu.memory_space<vmem>>, %arg10: memref<1x128xf32, #tpu.memory_space<vmem>>, %arg11: memref<1x128xf32, #tpu.memory_space<vmem>>, %arg12: memref<32x128xf32, #tpu.memory_space<vmem>>, %arg13: memref<40x128xf32, #tpu.memory_space<vmem>>) attributes {dimension_semantics = [], scalar_prefetch = 0 : i64, scratch_operands = 1 : i64, tpu.core_type = #tpu.core_type<tc>} {
    %c0 = arith.constant 0 : index
    %c0_0 = arith.constant 0 : index
    %0 = vector.load %arg1[%c0, %c0_0] : memref<32x1xi32, #tpu.memory_space<vmem>>, vector<32x1xi32>
    %c0_1 = arith.constant 0 : index
    %c0_2 = arith.constant 0 : index
    %1 = vector.load %arg0[%c0_1, %c0_2] : memref<40x128xf32, #tpu.memory_space<vmem>>, vector<32x128xf32>
    %2 = arith.truncf %1 : vector<32x128xf32> to vector<32x128xbf16>
    %c0_3 = arith.constant 0 : index
    %c0_4 = arith.constant 0 : index
    %c0_5 = arith.constant 0 : index
    %3 = vector.load %arg2[%c0_3, %c0_4, %c0_5] : memref<3x128x128xbf16, #tpu.memory_space<vmem>>, vector<1x128x128xbf16>
    %4 = vector.shape_cast %3 : vector<1x128x128xbf16> to vector<128x128xbf16>
    %cst = arith.constant dense<0.000000e+00> : vector<32x128xf32>
    %5 = tpu.matmul %2, %4, %cst {dimension_numbers = #tpu.dot_dimension_numbers<[1], [0], [0], [1], [0, 0, 1, 1], [], []>} : vector<32x128xbf16>, vector<128x128xbf16>, vector<32x128xf32> -> vector<32x128xf32>
    %c1 = arith.constant 1 : index
    %c0_6 = arith.constant 0 : index
    %6 = vector.load %arg0[%c1, %c0_6] : memref<40x128xf32, #tpu.memory_space<vmem>>, vector<32x128xf32>
    %7 = arith.truncf %6 : vector<32x128xf32> to vector<32x128xbf16>
    %c1_7 = arith.constant 1 : index
    %c0_8 = arith.constant 0 : index
    %c0_9 = arith.constant 0 : index
    %8 = vector.load %arg2[%c1_7, %c0_8, %c0_9] : memref<3x128x128xbf16, #tpu.memory_space<vmem>>, vector<1x128x128xbf16>
    %9 = vector.shape_cast %8 : vector<1x128x128xbf16> to vector<128x128xbf16>
    %cst_10 = arith.constant dense<0.000000e+00> : vector<32x128xf32>
    %10 = tpu.matmul %7, %9, %cst_10 {dimension_numbers = #tpu.dot_dimension_numbers<[1], [0], [0], [1], [0, 0, 1, 1], [], []>} : vector<32x128xbf16>, vector<128x128xbf16>, vector<32x128xf32> -> vector<32x128xf32>
    %11 = arith.addf %5, %10 : vector<32x128xf32>
    %c2 = arith.constant 2 : index
    %c0_11 = arith.constant 0 : index
    %12 = vector.load %arg0[%c2, %c0_11] : memref<40x128xf32, #tpu.memory_space<vmem>>, vector<32x128xf32>
    %13 = arith.truncf %12 : vector<32x128xf32> to vector<32x128xbf16>
    %c2_12 = arith.constant 2 : index
    %c0_13 = arith.constant 0 : index
    %c0_14 = arith.constant 0 : index
    %14 = vector.load %arg2[%c2_12, %c0_13, %c0_14] : memref<3x128x128xbf16, #tpu.memory_space<vmem>>, vector<1x128x128xbf16>
    %15 = vector.shape_cast %14 : vector<1x128x128xbf16> to vector<128x128xbf16>
    %cst_15 = arith.constant dense<0.000000e+00> : vector<32x128xf32>
    %16 = tpu.matmul %13, %15, %cst_15 {dimension_numbers = #tpu.dot_dimension_numbers<[1], [0], [0], [1], [0, 0, 1, 1], [], []>} : vector<32x128xbf16>, vector<128x128xbf16>, vector<32x128xf32> -> vector<32x128xf32>
    %17 = arith.addf %11, %16 : vector<32x128xf32>
    %c14_i32 = arith.constant 14 : i32
    %18 = vector.broadcast %c14_i32 : i32 to vector<32x1xi32>
    %19 = arith.cmpi slt, %0, %18 : vector<32x1xi32>
    %cst_16 = arith.constant 0.000000e+00 : f32
    %20 = vector.shape_cast %19 : vector<32x1xi1> to vector<32x1xi1>
    %21 = vector.broadcast %20 : vector<32x1xi1> to vector<32x128xi1>
    %22 = vector.broadcast %cst_16 : f32 to vector<32x128xf32>
    %23 = arith.select %21, %17, %22 : vector<32x128xi1>, vector<32x128xf32>
    %cst_17 = arith.constant dense<0.000000e+00> : vector<128xf32>
    %24 = vector.multi_reduction <add>, %23, %cst_17 [0] : vector<32x128xf32> to vector<128xf32>
    %25 = vector.shape_cast %24 : vector<128xf32> to vector<1x128xf32>
    %26 = arith.mulf %23, %23 : vector<32x128xf32>
    %cst_18 = arith.constant dense<0.000000e+00> : vector<128xf32>
    %27 = vector.multi_reduction <add>, %26, %cst_18 [0] : vector<32x128xf32> to vector<128xf32>
    %28 = vector.shape_cast %27 : vector<128xf32> to vector<1x128xf32>
    %29 = tpu.concatenate %25, %28 in 0 : vector<1x128xf32>, vector<1x128xf32> -> vector<2x128xf32>
    %c0_19 = arith.constant 0 : index
    %c0_20 = arith.constant 0 : index
    %30 = vector.load %arg4[%c0_19, %c0_20] : memref<128x128xf32, #tpu.memory_space<vmem>>, vector<128x128xf32>
    %cst_21 = arith.constant dense<0.000000e+00> : vector<2x128xf32>
    %31 = tpu.matmul %29, %30, %cst_21 {dimension_numbers = #tpu.dot_dimension_numbers<[1], [0], [0], [1], [0, 0, 1, 1], [], []>, precision = #tpu.contract_precision<fp32>} : vector<2x128xf32>, vector<128x128xf32>, vector<2x128xf32> -> vector<2x128xf32>
    %32 = vector.extract_strided_slice %31 {offsets = [0, 0], sizes = [1, 128], strides = [1, 1]} : vector<2x128xf32> to vector<1x128xf32>
    %33 = vector.extract_strided_slice %31 {offsets = [1, 0], sizes = [1, 128], strides = [1, 1]} : vector<2x128xf32> to vector<1x128xf32>
    %34 = arith.mulf %32, %32 : vector<1x128xf32>
    %35 = arith.subf %33, %34 : vector<1x128xf32>
    %cst_22 = arith.constant 9.99999974E-6 : f32
    %36 = vector.broadcast %cst_22 : f32 to vector<1x128xf32>
    %37 = arith.addf %35, %36 : vector<1x128xf32>
    %38 = math.rsqrt %37 : vector<1x128xf32>
    %c0_23 = arith.constant 0 : index
    %c0_24 = arith.constant 0 : index
    %39 = vector.load %arg6[%c0_23, %c0_24] : memref<1x128xf32, #tpu.memory_space<vmem>>, vector<1x128xf32>
    %40 = arith.mulf %38, %39 : vector<1x128xf32>
    %c0_25 = arith.constant 0 : index
    %c0_26 = arith.constant 0 : index
    %41 = vector.load %arg7[%c0_25, %c0_26] : memref<1x128xf32, #tpu.memory_space<vmem>>, vector<1x128xf32>
    %42 = arith.mulf %32, %40 : vector<1x128xf32>
    %43 = arith.subf %41, %42 : vector<1x128xf32>
    %44 = tpu.concatenate %40, %43 in 0 : vector<1x128xf32>, vector<1x128xf32> -> vector<2x128xf32>
    %c0_27 = arith.constant 0 : index
    %c0_28 = arith.constant 0 : index
    %45 = vector.load %arg5[%c0_27, %c0_28] : memref<128x128xf32, #tpu.memory_space<vmem>>, vector<128x128xf32>
    %cst_29 = arith.constant dense<0.000000e+00> : vector<2x128xf32>
    %46 = tpu.matmul %44, %45, %cst_29 {dimension_numbers = #tpu.dot_dimension_numbers<[1], [0], [0], [1], [0, 0, 1, 1], [], []>, precision = #tpu.contract_precision<fp32>} : vector<2x128xf32>, vector<128x128xf32>, vector<2x128xf32> -> vector<2x128xf32>
    %47 = vector.extract_strided_slice %46 {offsets = [0, 0], sizes = [1, 128], strides = [1, 1]} : vector<2x128xf32> to vector<1x128xf32>
    %48 = vector.broadcast %47 : vector<1x128xf32> to vector<32x128xf32>
    %49 = arith.mulf %17, %48 : vector<32x128xf32>
    %50 = vector.extract_strided_slice %46 {offsets = [1, 0], sizes = [1, 128], strides = [1, 1]} : vector<2x128xf32> to vector<1x128xf32>
    %51 = vector.broadcast %50 : vector<1x128xf32> to vector<32x128xf32>
    %52 = arith.addf %49, %51 : vector<32x128xf32>
    %cst_30 = arith.constant 0.000000e+00 : f32
    %53 = vector.broadcast %cst_30 : f32 to vector<32x128xf32>
    %54 = arith.maximumf %52, %53 : vector<32x128xf32>
    %c0_31 = arith.constant 0 : index
    %c0_32 = arith.constant 0 : index
    %55 = vector.load %arg13[%c0_31, %c0_32] : memref<40x128xf32, #tpu.memory_space<vmem>>, vector<32x128xf32>
    tpu.vector_store %arg13[%c0_31, %c0_32], %54 {strides = array<i32>} : memref<40x128xf32, #tpu.memory_space<vmem>>, vector<32x128xf32>,
    %cst_33 = arith.constant 0.000000e+00 : f32
    %56 = vector.broadcast %cst_33 : f32 to vector<8x128xf32>
    %c32 = arith.constant 32 : index
    %c0_34 = arith.constant 0 : index
    %57 = vector.load %arg13[%c32, %c0_34] : memref<40x128xf32, #tpu.memory_space<vmem>>, vector<8x128xf32>
    tpu.vector_store %arg13[%c32, %c0_34], %56 {strides = array<i32>} : memref<40x128xf32, #tpu.memory_space<vmem>>, vector<8x128xf32>,
    %c0_35 = arith.constant 0 : index
    %c0_36 = arith.constant 0 : index
    %58 = vector.load %arg13[%c0_35, %c0_36] : memref<40x128xf32, #tpu.memory_space<vmem>>, vector<32x128xf32>
    %59 = arith.truncf %58 : vector<32x128xf32> to vector<32x128xbf16>
    %c0_37 = arith.constant 0 : index
    %c0_38 = arith.constant 0 : index
    %c0_39 = arith.constant 0 : index
    %60 = vector.load %arg3[%c0_37, %c0_38, %c0_39] : memref<3x128x128xbf16, #tpu.memory_space<vmem>>, vector<1x128x128xbf16>
    %61 = vector.shape_cast %60 : vector<1x128x128xbf16> to vector<128x128xbf16>
    %cst_40 = arith.constant dense<0.000000e+00> : vector<32x128xf32>
    %62 = tpu.matmul %59, %61, %cst_40 {dimension_numbers = #tpu.dot_dimension_numbers<[1], [0], [0], [1], [0, 0, 1, 1], [], []>} : vector<32x128xbf16>, vector<128x128xbf16>, vector<32x128xf32> -> vector<32x128xf32>
    %c1_41 = arith.constant 1 : index
    %c0_42 = arith.constant 0 : index
    %63 = vector.load %arg13[%c1_41, %c0_42] : memref<40x128xf32, #tpu.memory_space<vmem>>, vector<32x128xf32>
    %64 = arith.truncf %63 : vector<32x128xf32> to vector<32x128xbf16>
    %c1_43 = arith.constant 1 : index
    %c0_44 = arith.constant 0 : index
    %c0_45 = arith.constant 0 : index
    %65 = vector.load %arg3[%c1_43, %c0_44, %c0_45] : memref<3x128x128xbf16, #tpu.memory_space<vmem>>, vector<1x128x128xbf16>
    %66 = vector.shape_cast %65 : vector<1x128x128xbf16> to vector<128x128xbf16>
    %cst_46 = arith.constant dense<0.000000e+00> : vector<32x128xf32>
    %67 = tpu.matmul %64, %66, %cst_46 {dimension_numbers = #tpu.dot_dimension_numbers<[1], [0], [0], [1], [0, 0, 1, 1], [], []>} : vector<32x128xbf16>, vector<128x128xbf16>, vector<32x128xf32> -> vector<32x128xf32>
    %68 = arith.addf %62, %67 : vector<32x128xf32>
    %c2_47 = arith.constant 2 : index
    %c0_48 = arith.constant 0 : index
    %69 = vector.load %arg13[%c2_47, %c0_48] : memref<40x128xf32, #tpu.memory_space<vmem>>, vector<32x128xf32>
    %70 = arith.truncf %69 : vector<32x128xf32> to vector<32x128xbf16>
    %c2_49 = arith.constant 2 : index
    %c0_50 = arith.constant 0 : index
    %c0_51 = arith.constant 0 : index
    %71 = vector.load %arg3[%c2_49, %c0_50, %c0_51] : memref<3x128x128xbf16, #tpu.memory_space<vmem>>, vector<1x128x128xbf16>
    %72 = vector.shape_cast %71 : vector<1x128x128xbf16> to vector<128x128xbf16>
    %cst_52 = arith.constant dense<0.000000e+00> : vector<32x128xf32>
    %73 = tpu.matmul %70, %72, %cst_52 {dimension_numbers = #tpu.dot_dimension_numbers<[1], [0], [0], [1], [0, 0, 1, 1], [], []>} : vector<32x128xbf16>, vector<128x128xbf16>, vector<32x128xf32> -> vector<32x128xf32>
    %74 = arith.addf %68, %73 : vector<32x128xf32>
    %c12_i32 = arith.constant 12 : i32
    %75 = vector.broadcast %c12_i32 : i32 to vector<32x1xi32>
    %76 = arith.cmpi slt, %0, %75 : vector<32x1xi32>
    %cst_53 = arith.constant 0.000000e+00 : f32
    %77 = vector.shape_cast %76 : vector<32x1xi1> to vector<32x1xi1>
    %78 = vector.broadcast %77 : vector<32x1xi1> to vector<32x128xi1>
    %79 = vector.broadcast %cst_53 : f32 to vector<32x128xf32>
    %80 = arith.select %78, %74, %79 : vector<32x128xi1>, vector<32x128xf32>
    %cst_54 = arith.constant dense<0.000000e+00> : vector<128xf32>
    %81 = vector.multi_reduction <add>, %80, %cst_54 [0] : vector<32x128xf32> to vector<128xf32>
    %82 = vector.shape_cast %81 : vector<128xf32> to vector<1x128xf32>
    %83 = arith.mulf %80, %80 : vector<32x128xf32>
    %cst_55 = arith.constant dense<0.000000e+00> : vector<128xf32>
    %84 = vector.multi_reduction <add>, %83, %cst_55 [0] : vector<32x128xf32> to vector<128xf32>
    %85 = vector.shape_cast %84 : vector<128xf32> to vector<1x128xf32>
    %86 = tpu.concatenate %82, %85 in 0 : vector<1x128xf32>, vector<1x128xf32> -> vector<2x128xf32>
    %c0_56 = arith.constant 0 : index
    %c0_57 = arith.constant 0 : index
    %87 = vector.load %arg8[%c0_56, %c0_57] : memref<128x128xf32, #tpu.memory_space<vmem>>, vector<128x128xf32>
    %cst_58 = arith.constant dense<0.000000e+00> : vector<2x128xf32>
    %88 = tpu.matmul %86, %87, %cst_58 {dimension_numbers = #tpu.dot_dimension_numbers<[1], [0], [0], [1], [0, 0, 1, 1], [], []>, precision = #tpu.contract_precision<fp32>} : vector<2x128xf32>, vector<128x128xf32>, vector<2x128xf32> -> vector<2x128xf32>
    %89 = vector.extract_strided_slice %88 {offsets = [0, 0], sizes = [1, 128], strides = [1, 1]} : vector<2x128xf32> to vector<1x128xf32>
    %90 = vector.extract_strided_slice %88 {offsets = [1, 0], sizes = [1, 128], strides = [1, 1]} : vector<2x128xf32> to vector<1x128xf32>
    %91 = arith.mulf %89, %89 : vector<1x128xf32>
    %92 = arith.subf %90, %91 : vector<1x128xf32>
    %cst_59 = arith.constant 9.99999974E-6 : f32
    %93 = vector.broadcast %cst_59 : f32 to vector<1x128xf32>
    %94 = arith.addf %92, %93 : vector<1x128xf32>
    %95 = math.rsqrt %94 : vector<1x128xf32>
    %c0_60 = arith.constant 0 : index
    %c0_61 = arith.constant 0 : index
    %96 = vector.load %arg10[%c0_60, %c0_61] : memref<1x128xf32, #tpu.memory_space<vmem>>, vector<1x128xf32>
    %97 = arith.mulf %95, %96 : vector<1x128xf32>
    %c0_62 = arith.constant 0 : index
    %c0_63 = arith.constant 0 : index
    %98 = vector.load %arg11[%c0_62, %c0_63] : memref<1x128xf32, #tpu.memory_space<vmem>>, vector<1x128xf32>
    %99 = arith.mulf %89, %97 : vector<1x128xf32>
    %100 = arith.subf %98, %99 : vector<1x128xf32>
    %101 = tpu.concatenate %97, %100 in 0 : vector<1x128xf32>, vector<1x128xf32> -> vector<2x128xf32>
    %c0_64 = arith.constant 0 : index
    %c0_65 = arith.constant 0 : index
    %102 = vector.load %arg9[%c0_64, %c0_65] : memref<128x128xf32, #tpu.memory_space<vmem>>, vector<128x128xf32>
    %cst_66 = arith.constant dense<0.000000e+00> : vector<2x128xf32>
    %103 = tpu.matmul %101, %102, %cst_66 {dimension_numbers = #tpu.dot_dimension_numbers<[1], [0], [0], [1], [0, 0, 1, 1], [], []>, precision = #tpu.contract_precision<fp32>} : vector<2x128xf32>, vector<128x128xf32>, vector<2x128xf32> -> vector<2x128xf32>
    %104 = vector.extract_strided_slice %103 {offsets = [0, 0], sizes = [1, 128], strides = [1, 1]} : vector<2x128xf32> to vector<1x128xf32>
    %105 = vector.broadcast %104 : vector<1x128xf32> to vector<32x128xf32>
    %106 = arith.mulf %74, %105 : vector<32x128xf32>
    %107 = vector.extract_strided_slice %103 {offsets = [1, 0], sizes = [1, 128], strides = [1, 1]} : vector<2x128xf32> to vector<1x128xf32>
    %108 = vector.broadcast %107 : vector<1x128xf32> to vector<32x128xf32>
    %109 = arith.addf %106, %108 : vector<32x128xf32>
    %cst_67 = arith.constant 0.000000e+00 : f32
    %110 = vector.broadcast %cst_67 : f32 to vector<32x128xf32>
    %111 = arith.maximumf %109, %110 : vector<32x128xf32>
    %c0_68 = arith.constant 0 : index
    %c0_69 = arith.constant 0 : index
    %112 = vector.load %arg12[%c0_68, %c0_69] : memref<32x128xf32, #tpu.memory_space<vmem>>, vector<32x128xf32>
    tpu.vector_store %arg12[%c0_68, %c0_69], %111 {strides = array<i32>} : memref<32x128xf32, #tpu.memory_space<vmem>>, vector<32x128xf32>,
    return
  }
}

</mosaic_0001>

<bundles_post_ra>
// kernel: tile.0
= control target key start
LH: loop header
LB: loop body
LE: loop exit
PB: predicated region body
PF: predicated region fallthrough
CT: control target
= control target key end

     0   :  { %s130_s8 = smov 127   ;;  %s131_s9 = smov 123   ;;  %vm7_vm0 = vcmask 7168   ;;  %s221_s0 = inlined_call_operand.vmem [shape: s32[2,16], index: 0, kind: input, shape index: {}]   ;;  %s222_s1 = inlined_call_operand.vmem [shape: s32[32,1], index: 1, kind: output, shape index: {}]  }
   0x1   :  { %v4_v0 = vld [vmem:[%s221_s0] sm:$0x3]  ;;  %s129_s0 = smov 125   ;;  %s132_s10 = smov 124  }
   0x2   :  { %5 = vst [vmem:[#allocation0] sm:$0x3] %v4_v0  ;;  %s133_s11 = smov 126   ;;  %s134_s12 = smov 122  }
   0x3   :  { %s135_s13 = smov 120   ;;  %s136_s14 = smov 121  }
   0x4   :  { %s137_s15 = smov 119   ;;  %s138_s16 = smov 117  }
   0x5   :  { %s139_s17 = smov 118   ;;  %s140_s18 = smov 116  }
   0x6   :  { %s141_s19 = smov 114   ;;  %s142_s20 = smov 115  }
   0x7   :  { %s143_s21 = smov 113  }
   0x9   :  { %v21_v1 = vld [vmem:[#allocation0] sm:$0x3]  }
   0xa   :  { %v9_v2 = vld [vmem:[#allocation0] sm:$0x3]   ;;  %22 = vrot.lane.b32.xlu1 %v21_v1, %s129_s0 }
   0xb   :  { %10 = vrot.lane.b32.xlu0 %v9_v2, %s130_s8  ;;  %v33_v3 = vld [vmem:[#allocation0] sm:$0x3]  }
   0xc   :  { %34 = vrot.lane.b32.xlu2 %v33_v3, %s131_s9  ;;  %v27_v4 = vld [vmem:[#allocation0] sm:$0x3]  }
   0xd   :  { %v15_v5 = vld [vmem:[#allocation0] sm:$0x3]  }
   0xe   :  { %v39_v6 = vld [vmem:[#allocation0] sm:$0x3]  }
   0xf   :  { %v51_v7 = vld [vmem:[#allocation0] sm:$0x3]  }
  0x10   :  { %v45_v8 = vld [vmem:[#allocation0] sm:$0x3]  }
  0x11   :  { %v57_v9 = vld [vmem:[#allocation0] sm:$0x3]  }
  0x12   :  { %28 = vrot.lane.b32.xlu1 %v27_v4, %s132_s10  ;;  %v69_v10 = vld [vmem:[#allocation0] sm:$0x3]  }
  0x13   :  { %16 = vrot.lane.b32.xlu0 %v15_v5, %s133_s11  ;;  %v63_v11 = vld [vmem:[#allocation0] sm:$0x3]  }
  0x14   :  { %40 = vrot.lane.b32.xlu2 %v39_v6, %s134_s12  ;;  %v75_v12 = vld [vmem:[#allocation0] sm:$0x3]  }
  0x15   :  { %v87_v13 = vld [vmem:[#allocation0] sm:$0x3]  }
  0x16   :  { %v81_v14 = vld [vmem:[#allocation0] sm:$0x3]  }
  0x17   :  { %v93_v15 = vld [vmem:[#allocation0] sm:$0x3]  }
  0x18   :  { %v6_v21 = vld [vmem:[#allocation0] sm:$0x3]  }
  0x19   :  { %8 = vst.msk [vmem:[%s222_s1] ss:$16 sm:$0x3] %vm7_vm0, %v6_v21  }
  0x1a   :  { %52 = vrot.lane.b32.xlu1 %v51_v7, %s135_s13 }
  0x1b   :  { %46 = vrot.lane.b32.xlu0 %v45_v8, %s136_s14 }
  0x1c   :  { %58 = vrot.lane.b32.xlu2 %v57_v9, %s137_s15 }
  0x22   :  { %70 = vrot.lane.b32.xlu1 %v69_v10, %s138_s16 }
  0x23   :  { %64 = vrot.lane.b32.xlu0 %v63_v11, %s139_s17 }
  0x24   :  { %76 = vrot.lane.b32.xlu2 %v75_v12, %s140_s18 }
  0x2a   :  { %88 = vrot.lane.b32.xlu1 %v87_v13, %s141_s19 }
  0x2b   :  { %82 = vrot.lane.b32.xlu0 %v81_v14, %s142_s20 }
  0x2c   :  { %94 = vrot.lane.b32.xlu2 %v93_v15, %s143_s21 }
  0x66   :  { %v35_v16 = vpop.permute.xlu2 %34  }
  0x67   :  { %103 = vst.msk [vmem:[%s222_s1 + $0x5] ss:$16 sm:$0x3] %vm7_vm0, %v35_v16  }
  0x6e   :  { %v41_v17 = vpop.permute.xlu2 %40  }
  0x6f   :  { %104 = vst.msk [vmem:[%s222_s1 + $0x6] ss:$16 sm:$0x3] %vm7_vm0, %v41_v17  }
  0x76   :  { %v59_v18 = vpop.permute.xlu2 %58  }
  0x77   :  { %107 = vst.msk [vmem:[%s222_s1 + $0x9] ss:$16 sm:$0x3] %vm7_vm0, %v59_v18  }
  0x7c   :  { %v23_v19 = vpop.permute.xlu1 %22  }
  0x7d   :  { %v11_v20 = vpop.permute.xlu0 %10   ;;  %101 = vst.msk [vmem:[%s222_s1 + $0x3] ss:$16 sm:$0x3] %vm7_vm0, %v23_v19  }
  0x7e   :  { %99 = vst.msk [vmem:[%s222_s1 + $0x1] ss:$16 sm:$0x3] %vm7_vm0, %v11_v20   ;;  %v77_v22 = vpop.permute.xlu2 %76  }
  0x7f   :  { %110 = vst.msk [vmem:[%s222_s1 + $0xc] ss:$16 sm:$0x3] %vm7_vm0, %v77_v22  }
  0x84   :  { %v29_v23 = vpop.permute.xlu1 %28  }
  0x85   :  { %v17_v24 = vpop.permute.xlu0 %16   ;;  %102 = vst.msk [vmem:[%s222_s1 + $0x4] ss:$16 sm:$0x3] %vm7_vm0, %v29_v23  }
  0x86   :  { %100 = vst.msk [vmem:[%s222_s1 + $0x2] ss:$16 sm:$0x3] %vm7_vm0, %v17_v24   ;;  %v95_v25 = vpop.permute.xlu2 %94  }
  0x87   :  { %113 = vst.msk [vmem:[%s222_s1 + $0xf] ss:$16 sm:$0x3] %vm7_vm0, %v95_v25  }
  0x8c   :  { %v53_v26 = vpop.permute.xlu1 %52  }
  0x8d   :  { %v47_v27 = vpop.permute.xlu0 %46   ;;  %106 = vst.msk [vmem:[%s222_s1 + $0x8] ss:$16 sm:$0x3] %vm7_vm0, %v53_v26  }
  0x8e   :  { %105 = vst.msk [vmem:[%s222_s1 + $0x7] ss:$16 sm:$0x3] %vm7_vm0, %v47_v27  }
  0x94   :  { %v71_v28 = vpop.permute.xlu1 %70  }
  0x95   :  { %v65_v29 = vpop.permute.xlu0 %64   ;;  %109 = vst.msk [vmem:[%s222_s1 + $0xb] ss:$16 sm:$0x3] %vm7_vm0, %v71_v28  }
  0x96   :  { %108 = vst.msk [vmem:[%s222_s1 + $0xa] ss:$16 sm:$0x3] %vm7_vm0, %v65_v29  }
  0x9c   :  { %v89_v30 = vpop.permute.xlu1 %88  }
  0x9d   :  { %v83_v31 = vpop.permute.xlu0 %82   ;;  %112 = vst.msk [vmem:[%s222_s1 + $0xe] ss:$16 sm:$0x3] %vm7_vm0, %v89_v30  }
  0x9e   :  { %111 = vst.msk [vmem:[%s222_s1 + $0xd] ss:$16 sm:$0x3] %vm7_vm0, %v83_v31  }

// kernel: downblock_forward.1
= control target key start
LH: loop header
LB: loop body
LE: loop exit
PB: predicated region body
PF: predicated region fallthrough
CT: control target
= control target key end

     0   :  { %v2542_v6 = vmov 0   ;;  %vm368_vm10 = vcmask 1040384   ;;  %s3970_s2 = inlined_call_operand.vmem [shape: bf16[3,128,128], index: 2, kind: input, shape index: {}]   ;;  %s3971_s1 = inlined_call_operand.vmem [shape: s32[32,1], index: 1, kind: input, shape index: {}]   ;;  %s3972_s4 = inlined_call_operand.vmem [shape: f32[128,128], index: 4, kind: input, shape index: {}]   ;;  %s3973_s0 = inlined_call_operand.vmem [shape: f32[40,128], index: 0, kind: input, shape index: {}]   ;;  %s3974_s6 = inlined_call_operand.vmem [shape: f32[1,128], index: 6, kind: input, shape index: {}]   ;;  %s3975_s5 = inlined_call_operand.vmem [shape: f32[128,128], index: 5, kind: input, shape index: {}]   ;;  %s3976_s7 = inlined_call_operand.vmem [shape: f32[1,128], index: 7, kind: input, shape index: {}]   ;;  %s3977_s3 = inlined_call_operand.vmem [shape: bf16[3,128,128], index: 3, kind: input, shape index: {}]   ;;  %s3978_s8 = inlined_call_operand.vmem [shape: f32[128,128], index: 8, kind: input, shape index: {}]   ;;  %s3979_s10 = inlined_call_operand.vmem [shape: f32[1,128], index: 10, kind: input, shape index: {}]   ;;  %s3980_s9 = inlined_call_operand.vmem [shape: f32[128,128], index: 9, kind: input, shape index: {}]   ;;  %s3981_s11 = inlined_call_operand.vmem [shape: f32[1,128], index: 11, kind: input, shape index: {}]   ;;  %s3982_s12 = inlined_call_operand.vmem [shape: f32[32,128], index: 12, kind: output, shape index: {}]  }
   0x1   :  { %v2496_v0 = vld [vmem:[%s3970_s2 + $0x78] sm:$0xff]  ;;  %v2495_v3 = vld [vmem:[%s3970_s2 + $0x70] sm:$0xff]  ;;  %2531 = vset.pattern.permute.xlu0 %v2542_v6  ;;  %2532 = vset.pattern.permute.xlu1 %v2542_v6  ;;  %v2494_v7 = vld [vmem:[%s3970_s2 + $0x68] sm:$0xff] }
   0x2   :  { %v2488_v1 = vld [vmem:[%s3970_s2 + $0x38] sm:$0xff]  ;;  %138 = vmatpush.bf16.msra.mxu0 %v2496_v0  ;;  %v2487_v4 = vld [vmem:[%s3970_s2 + $0x30] sm:$0xff]  ;;  %2533 = vset.pattern.permute.xlu2 %v2542_v6  ;;  %v2486_v8 = vld [vmem:[%s3970_s2 + $0x28] sm:$0xff] }
   0x3   :  { %v2504_v2 = vld [vmem:[%s3970_s2 + $0xb8] sm:$0xff]  ;;  %205 = vmatpush.bf16.msra.mxu1 %v2488_v1  ;;  %v2503_v5 = vld [vmem:[%s3970_s2 + $0xb0] sm:$0xff]  ;;  %v2502_v9 = vld [vmem:[%s3970_s2 + $0xa8] sm:$0xff] }
   0x4   :  { %295 = vmatpush.bf16.msra.mxu2 %v2504_v2  ;;  %v2493_v10 = vld [vmem:[%s3970_s2 + $0x60] sm:$0xff]  ;;  %v2492_v15 = vld [vmem:[%s3970_s2 + $0x58] sm:$0xff]  ;;  %v2491_v18 = vld [vmem:[%s3970_s2 + $0x50] sm:$0xff] }
   0x5   :  { %v2485_v11 = vld [vmem:[%s3970_s2 + $0x20] sm:$0xff]  ;;  %v2484_v16 = vld [vmem:[%s3970_s2 + $0x18] sm:$0xff]  ;;  %v43_v19 = vld [vmem:[%s3971_s1 + $0x10] sm:$0xff] }
   0x6   :  { %139 = vmatpush.bf16.msra.mxu0 %v2495_v3  ;;  %v41_v12 = vld [vmem:[%s3971_s1] sm:$0xff]  ;;  %v2500_v17 = vld [vmem:[%s3970_s2 + $0x98] sm:$0xff]  ;;  %v2483_v20 = vld [vmem:[%s3970_s2 + $0x10] sm:$0xff]  ;;  %vm320_vm1 = vcmp.lt.s32.totalorder %v43_v19, 14  ;;  %vm1409_vm4 = vcmp.lt.s32.totalorder %v43_v19, 12 }
   0x7   :  { %206 = vmatpush.bf16.msra.mxu1 %v2487_v4  ;;  %v2501_v13 = vld [vmem:[%s3970_s2 + $0xa0] sm:$0xff]  ;;  %vm318_vm0 = vcmp.lt.s32.totalorder %v41_v12, 14  ;;  %v42_v21 = vld [vmem:[%s3971_s1 + $0x8] sm:$0xff]  ;;  %v385_v22 = vld [vmem:[%s3972_s4 + $0x78] sm:$0xff]  ;;  %v324_v24 = vsel %vm320_vm1, 1, %v2542_v6  ;;  %v1413_v40 = vsel %vm1409_vm4, 1, %v2542_v6 }
   0x8   :  { %296 = vmatpush.bf16.msra.mxu2 %v2503_v5  ;;  %v322_v14 = vsel %vm318_vm0, 1, %v2542_v6  ;;  %v2499_v23 = vld [vmem:[%s3970_s2 + $0x90] sm:$0xff]  ;;  %vm319_vm2 = vcmp.lt.s32.totalorder %v42_v21, 14  ;;  %v44_v25 = vld [vmem:[%s3971_s1 + $0x18] sm:$0xff]  ;;  %333 = vperm.xlu1 %2532, %v324_v24   ;;  %v2684_v27 = vand.u32 4294901760, %v385_v22  ;;  %v2490_v28 = vld [vmem:[%s3970_s2 + $0x48] sm:$0xff] }
   0x9   :  { %327 = vperm.xlu0 %2531, %v322_v14   ;;  %v323_v26 = vsel %vm319_vm2, 1, %v2542_v6  ;;  %v2482_v29 = vld [vmem:[%s3970_s2 + $0x8] sm:$0xff]  ;;  %vm321_vm3 = vcmp.lt.s32.totalorder %v44_v25, 14  ;;  %v2489_v33 = vld [vmem:[%s3970_s2 + $0x40] sm:$0xff]  ;;  %vm1410_vm5 = vcmp.lt.s32.totalorder %v44_v25, 12  ;;  %v69_v50 = vld [vmem:[%s3973_s0 + $0x11] sm:$0xff] }
   0xa   :  { %140 = vmatpush.bf16.msra.mxu0 %v2494_v7  ;;  %v2693_v30 = vsub.f32 %v385_v22, %v2684_v27  ;;  %v2498_v31 = vld [vmem:[%s3970_s2 + $0x88] sm:$0xff]  ;;  %387 = vmatpush.msra.mxu3 %v2684_v27  ;;  %v2481_v34 = vld [vmem:[%s3970_s2] sm:$0xff]  ;;  %v325_v36 = vsel %vm321_vm3, 1, %v2542_v6  ;;  %v1414_v49 = vsel %vm1410_vm5, 1, %v2542_v6  ;;  %v47_v52 = vld [vmem:[%s3973_s0 + $0x10] sm:$0xff] }
   0xb   :  { %207 = vmatpush.bf16.msra.mxu1 %v2486_v8  ;;  %v67_v35 = vld [vmem:[%s3973_s0 + $0x1] sm:$0xff]  ;;  %v68_v37 = vld [vmem:[%s3973_s0 + $0x9] sm:$0xff]  ;;  %v70_v51 = vld [vmem:[%s3973_s0 + $0x19] sm:$0xff] }
   0xc   :  { %297 = vmatpush.bf16.msra.mxu2 %v2502_v9  ;;  %v429_v32 = vand.u32 4294901760, %v2693_v30  ;;  %v45_v38 = vld [vmem:[%s3973_s0] sm:$0xff]  ;;  %v46_v39 = vld [vmem:[%s3973_s0 + $0x8] sm:$0xff]  ;;  %v71_v46 = vpack.c.bf16 %v68_v37, %v67_v35  ;;  %v48_v53 = vld [vmem:[%s3973_s0 + $0x18] sm:$0xff]  ;;  %v72_v56 = vpack.c.bf16 %v70_v51, %v69_v50 }
   0xd   :  { %v2497_v42 = vld [vmem:[%s3970_s2 + $0x80] sm:$0xff]  ;;  %v225_v44 = vld [vmem:[%s3973_s0 + $0xa] sm:$0xff]  ;;  %v49_v47 = vpack.c.bf16 %v46_v39, %v45_v38  ;;  %v226_v54 = vld [vmem:[%s3973_s0 + $0x12] sm:$0xff]  ;;  %v50_v57 = vpack.c.bf16 %v48_v53, %v47_v52 }
   0xe   :  { %141 = vmatpush.bf16.msra.mxu0 %v2493_v10  ;;  %v430_v41 = vsub.f32 %v2693_v30, %v429_v32  ;;  %v224_v43 = vld [vmem:[%s3973_s0 + $0x2] sm:$0xff]  ;;  %v227_v55 = vld [vmem:[%s3973_s0 + $0x1a] sm:$0xff]  ;;  %v384_v59 = vld [vmem:[%s3972_s4 + $0x70] sm:$0xff] }
   0xf   :  { %208 = vmatpush.bf16.msra.mxu1 %v2485_v11  ;;  %v228_v48 = vpack.c.bf16 %v225_v44, %v224_v43  ;;  %v229_v58 = vpack.c.bf16 %v227_v55, %v226_v54  ;;  %v2756_v60 = vand.u32 4294901760, %v384_v59  ;;  %v383_v61 = vld [vmem:[%s3972_s4 + $0x68] sm:$0xff]  ;;  %v382_v0 = vld [vmem:[%s3972_s4 + $0x60] sm:$0xff]  ;;  %v381_v4 = vld [vmem:[%s3972_s4 + $0x58] sm:$0xff] }
  0x10   :  { %298 = vmatpush.bf16.msra.mxu2 %v2501_v13  ;;  %336 = vperm.xlu1 %2532, %v325_v36   ;;  %v431_v45 = vand.u32 4294901760, %v430_v41  ;;  %v2764_v63 = vand.u32 4294901760, %v383_v61  ;;  %v2775_v3 = vand.u32 4294901760, %v382_v0  ;;  %v2790_v9 = vand.u32 4294901760, %v381_v4  ;;  %v380_v10 = vld [vmem:[%s3972_s4 + $0x50] sm:$0xff]  ;;  %v378_v22 = vld [vmem:[%s3972_s4 + $0x40] sm:$0xff] }
  0x11   :  { %330 = vperm.xlu0 %2531, %v323_v26   ;;  %v2762_v62 = vsub.f32 %v384_v59, %v2756_v60  ;;  %389 = vmatpush.msra.mxu3 %v2756_v60  ;;  %v2831_v25 = vand.u32 4294901760, %v378_v22  ;;  %v376_v37 = vld [vmem:[%s3972_s4 + $0x30] sm:$0xff]  ;;  %v375_v43 = vld [vmem:[%s3972_s4 + $0x28] sm:$0xff]  ;;  %v373_v55 = vld [vmem:[%s3972_s4 + $0x18] sm:$0xff] }
  0x12   :  { %142 = vmatpush.bf16.msra.mxu0 %v2492_v15  ;;  %v2773_v2 = vsub.f32 %v383_v61, %v2764_v63  ;;  %v2788_v8 = vsub.f32 %v382_v0, %v2775_v3  ;;  %v2803_v14 = vsub.f32 %v381_v4, %v2790_v9  ;;  %v2807_v15 = vand.u32 4294901760, %v380_v10  ;;  %v372_v0 = vld [vmem:[%s3972_s4 + $0x10] sm:$0xff] }
  0x13   :  { %209 = vmatpush.bf16.msra.mxu1 %v2484_v16  ;;  %v435_v1 = vand.u32 4294901760, %v2762_v62  ;;  %391 = vmatpush.msra.mxu3 %v2764_v63  ;;  %v379_v16 = vld [vmem:[%s3972_s4 + $0x48] sm:$0xff] }
  0x14   :  { %299 = vmatpush.bf16.msra.mxu2 %v2500_v17  ;;  %v441_v7 = vand.u32 4294901760, %v2773_v2  ;;  %v447_v13 = vand.u32 4294901760, %v2788_v8  ;;  %v453_v19 = vand.u32 4294901760, %v2803_v14  ;;  %v2821_v21 = vand.u32 4294901760, %v379_v16 }
  0x15   :  { %v436_v5 = vsub.f32 %v2762_v62, %v435_v1  ;;  %393 = vmatpush.msra.mxu3 %v2775_v3 }
  0x16   :  { %143 = vmatpush.bf16.msra.mxu0 %v2491_v18  ;;  %v442_v12 = vsub.f32 %v2773_v2, %v441_v7  ;;  %v448_v18 = vsub.f32 %v2788_v8, %v447_v13  ;;  %v454_v24 = vsub.f32 %v2803_v14, %v453_v19 }
  0x17   :  { %210 = vmatpush.bf16.msra.mxu1 %v2483_v20  ;;  %v437_v11 = vand.u32 4294901760, %v436_v5  ;;  %395 = vmatpush.msra.mxu3 %v2790_v9  ;;  %v2819_v20 = vsub.f32 %v380_v10, %v2807_v15  ;;  %v2919_v10 = vand.u32 4294901760, %v372_v0 }
  0x18   :  { %300 = vmatpush.bf16.msra.mxu2 %v2499_v23  ;;  %1425 = vperm.xlu1 %2532, %v1414_v49   ;;  %v443_v17 = vand.u32 4294901760, %v442_v12  ;;  %v449_v23 = vand.u32 4294901760, %v448_v18  ;;  %v374_v49 = vld [vmem:[%s3972_s4 + $0x20] sm:$0xff] }
  0x19   :  { %1422 = vperm.xlu0 %2531, %v1413_v40   ;;  %397 = vmatpush.msra.mxu3 %v2807_v15  ;;  %v459_v26 = vand.u32 4294901760, %v2819_v20  ;;  %v2861_v40 = vand.u32 4294901760, %v376_v37  ;;  %v2895_v54 = vand.u32 4294901760, %v374_v49  ;;  %v2933_v18 = vsub.f32 %v372_v0, %v2919_v10 }
  0x1a   :  { %144 = vmatpush.bf16.msra.mxu0 %v2490_v28  ;;  %v2835_v28 = vsub.f32 %v379_v16, %v2821_v21  ;;  %v371_v16 = vld [vmem:[%s3972_s4 + $0x8] sm:$0xff] }
  0x1b   :  { %211 = vmatpush.bf16.msra.mxu1 %v2482_v29  ;;  %v377_v29 = vld [vmem:[%s3972_s4 + $0x38] sm:$0xff]  ;;  %399 = vmatpush.msra.mxu3 %v2821_v21  ;;  %v460_v35 = vsub.f32 %v2819_v20, %v459_v26  ;;  %v2910_v61 = vsub.f32 %v374_v49, %v2895_v54 }
  0x1c   :  { %301 = vmatpush.bf16.msra.mxu2 %v2498_v31  ;;  %v455_v31 = vand.u32 4294901760, %v454_v24  ;;  %v465_v36 = vand.u32 4294901760, %v2835_v28 }
  0x1d   :  { %401 = vmatpush.msra.mxu3 %v2831_v25  ;;  %v461_v41 = vand.u32 4294901760, %v460_v35  ;;  %v495_v12 = vand.u32 4294901760, %v2910_v61  ;;  %v507_v35 = vand.u32 4294901760, %v2933_v18 }
  0x1e   :  { %145 = vmatpush.bf16.msra.mxu0 %v2489_v33  ;;  %v2843_v33 = vsub.f32 %v378_v22, %v2831_v25  ;;  %v2935_v22 = vand.u32 4294901760, %v371_v16 }
  0x1f   :  { %212 = vmatpush.bf16.msra.mxu1 %v2481_v34  ;;  %v2845_v34 = vand.u32 4294901760, %v377_v29  ;;  %v496_v24 = vsub.f32 %v2910_v61, %v495_v12 }
  0x20   :  { %302 = vmatpush.bf16.msra.mxu2 %v2497_v42  ;;  %v471_v38 = vand.u32 4294901760, %v2843_v33  ;;  %v466_v42 = vsub.f32 %v2835_v28, %v465_v36 }
  0x21   :  { %146 = vmatmul.bf16.vlgmr.msra.gmra.mxu0 %v71_v46  ;;  %v2859_v39 = vsub.f32 %v377_v29, %v2845_v34  ;;  %403 = vmatpush.msra.mxu3 %v2845_v34  ;;  %v2877_v46 = vsub.f32 %v376_v37, %v2861_v40  ;;  %v370_v29 = vld [vmem:[%s3972_s4] sm:$0xff]  ;;  %v2951_v37 = vsub.f32 %v371_v16, %v2935_v22 }
  0x22   :  { %432 = vmatpush.msrb.mxu0 %v431_v45  ;;  %213 = vmatmul.bf16.vlgmr.msra.gmra.mxu1 %v49_v47  ;;  %v472_v44 = vsub.f32 %v2843_v33, %v471_v38  ;;  %v2879_v47 = vand.u32 4294901760, %v375_v43 }
  0x23   :  { %530 = vmatpush.msrb.mxu1 %v2693_v30  ;;  %303 = vmatmul.bf16.vlgmr.msra.gmra.mxu2 %v228_v48  ;;  %v477_v45 = vand.u32 4294901760, %v2859_v39  ;;  %v467_v48 = vand.u32 4294901760, %v466_v42  ;;  %v483_v52 = vand.u32 4294901760, %v2877_v46  ;;  %v497_v42 = vand.u32 4294901760, %v496_v24 }
  0x24   :  { %583 = vmatpush.msrb.mxu2 %v2684_v27  ;;  %438 = vmatpush.msrb.mxu0 %v437_v11  ;;  %v473_v50 = vand.u32 4294901760, %v472_v44  ;;  %v2893_v53 = vsub.f32 %v375_v43, %v2879_v47  ;;  %v508_v44 = vsub.f32 %v2933_v18, %v507_v35 }
  0x25   :  { %533 = vmatpush.msrb.mxu1 %v2762_v62  ;;  %405 = vmatpush.msra.mxu3 %v2861_v40  ;;  %v478_v51 = vsub.f32 %v2859_v39, %v477_v45 }
  0x26   :  { %585 = vmatpush.msrb.mxu2 %v2756_v60  ;;  %444 = vmatpush.msrb.mxu0 %v443_v17  ;;  %v489_v59 = vand.u32 4294901760, %v2893_v53 }
  0x27   :  { %536 = vmatpush.msrb.mxu1 %v2773_v2  ;;  %407 = vmatpush.msra.mxu3 %v2879_v47 }
  0x28   :  { %587 = vmatpush.msrb.mxu2 %v2764_v63  ;;  %450 = vmatpush.msrb.mxu0 %v449_v23  ;;  %v490_v11 = vsub.f32 %v2893_v53, %v489_v59 }
  0x29   :  { %539 = vmatpush.msrb.mxu1 %v2788_v8  ;;  %409 = vmatpush.msra.mxu3 %v2895_v54 }
  0x2a   :  { %589 = vmatpush.msrb.mxu2 %v2775_v3  ;;  %456 = vmatpush.msrb.mxu0 %v455_v31  ;;  %v491_v23 = vand.u32 4294901760, %v490_v11 }
  0x2b   :  { %542 = vmatpush.msrb.mxu1 %v2803_v14 }
  0x2c   :  { %591 = vmatpush.msrb.mxu2 %v2790_v9  ;;  %462 = vmatpush.msrb.mxu0 %v461_v41  ;;  %v2953_v41 = vand.u32 4294901760, %v370_v29 }
  0x2d   :  { %545 = vmatpush.msrb.mxu1 %v2819_v20 }
  0x2e   :  { %593 = vmatpush.msrb.mxu2 %v2807_v15  ;;  %468 = vmatpush.msrb.mxu0 %v467_v48  ;;  %v513_v48 = vand.u32 4294901760, %v2951_v37  ;;  %v518_v49 = vsub.f32 %v370_v29, %v2953_v41 }
  0x2f   :  { %548 = vmatpush.msrb.mxu1 %v2835_v28 }
  0x30   :  { %595 = vmatpush.msrb.mxu2 %v2821_v21  ;;  %474 = vmatpush.msrb.mxu0 %v473_v50  ;;  %v509_v50 = vand.u32 4294901760, %v508_v44 }
  0x31   :  { %151 = vmatmul.bf16.gmra.mxu0 %v72_v56  ;;  %551 = vmatpush.msrb.mxu1 %v2843_v33  ;;  %v479_v56 = vand.u32 4294901760, %v478_v51  ;;  %v514_v51 = vsub.f32 %v2951_v37, %v513_v48 }
  0x32   :  { %218 = vmatmul.bf16.gmra.mxu1 %v50_v57  ;;  %597 = vmatpush.msrb.mxu2 %v2831_v25  ;;  %v484_v57 = vsub.f32 %v2877_v46, %v483_v52 }
  0x33   :  { %308 = vmatmul.bf16.gmra.mxu2 %v229_v58  ;;  %554 = vmatpush.msrb.mxu1 %v2859_v39  ;;  %v2904_v58 = vand.u32 4294901760, %v373_v55 }
  0x34   :  { %599 = vmatpush.msrb.mxu2 %v2845_v34  ;;  %v485_v4 = vand.u32 4294901760, %v484_v57  ;;  %480 = vmatpush.msrb.mxu0 %v479_v56  ;;  %v515_v56 = vand.u32 4294901760, %v514_v51  ;;  %v772_v51 = vld [vmem:[%s3975_s5 + $0x70] sm:$0xff] }
  0x35   :  { %557 = vmatpush.msrb.mxu1 %v2877_v46  ;;  %v2917_v5 = vsub.f32 %v373_v55, %v2904_v58  ;;  %411 = vmatpush.msra.mxu3 %v2904_v58  ;;  %v519_v55 = vand.u32 4294901760, %v518_v49 }
  0x36   :  { %601 = vmatpush.msrb.mxu2 %v2861_v40  ;;  %486 = vmatpush.msrb.mxu0 %v485_v4 }
  0x37   :  { %560 = vmatpush.msrb.mxu1 %v2893_v53  ;;  %v501_v17 = vand.u32 4294901760, %v2917_v5  ;;  %413 = vmatpush.msra.mxu3 %v2919_v10  ;;  %v520_v57 = vsub.f32 %v518_v49, %v519_v55 }
  0x38   :  { %603 = vmatpush.msrb.mxu2 %v2879_v47  ;;  %492 = vmatpush.msrb.mxu0 %v491_v23 }
  0x39   :  { %563 = vmatpush.msrb.mxu1 %v2910_v61  ;;  %v502_v31 = vsub.f32 %v2917_v5, %v501_v17  ;;  %415 = vmatpush.msra.mxu3 %v2935_v22  ;;  %v521_v0 = vand.u32 4294901760, %v520_v57  ;;  %v771_v57 = vld [vmem:[%s3975_s5 + $0x68] sm:$0xff] }
  0x3a   :  { %605 = vmatpush.msrb.mxu2 %v2895_v54  ;;  %498 = vmatpush.msrb.mxu0 %v497_v42 }
  0x3b   :  { %566 = vmatpush.msrb.mxu1 %v2917_v5  ;;  %v503_v43 = vand.u32 4294901760, %v502_v31  ;;  %417 = vmatpush.msra.mxu3 %v2953_v41 }
  0x3c   :  { %607 = vmatpush.msrb.mxu2 %v2904_v58 }
  0x3d   :  { %569 = vmatpush.msrb.mxu1 %v2933_v18  ;;  %624 = vmatpush.msrb.mxu3 %v429_v32 }
  0x3e   :  { %609 = vmatpush.msrb.mxu2 %v2919_v10  ;;  %504 = vmatpush.msrb.mxu0 %v503_v43 }
  0x3f   :  { %572 = vmatpush.msrb.mxu1 %v2951_v37  ;;  %628 = vmatpush.msrb.mxu3 %v435_v1 }
  0x40   :  { %611 = vmatpush.msrb.mxu2 %v2935_v22  ;;  %510 = vmatpush.msrb.mxu0 %v509_v50 }
  0x41   :  { %575 = vmatpush.msrb.mxu1 %v518_v49  ;;  %632 = vmatpush.msrb.mxu3 %v441_v7  ;;  %v773_v49 = vld [vmem:[%s3975_s5 + $0x78] sm:$0xff] }
  0x42   :  { %613 = vmatpush.msrb.mxu2 %v2953_v41  ;;  %516 = vmatpush.msrb.mxu0 %v515_v56  ;;  %v3025_v50 = vand.u32 4294901760, %v773_v49  ;;  %v3033_v56 = vand.u32 4294901760, %v772_v51 }
  0x43   :  { %636 = vmatpush.msrb.mxu3 %v447_v13 }
  0x44   :  { %522 = vmatpush.msrb.mxu0 %v521_v0  ;;  %775 = vmatpush.msra.mxu1 %v3025_v50 }
  0x45   :  { %640 = vmatpush.msrb.mxu3 %v453_v19 }
  0x46   :  { %691 = vmatpush.msra.mxu0 %v2684_v27  ;;  %777 = vmatpush.msra.mxu1 %v3033_v56 }
  0x47   :  { %644 = vmatpush.msrb.mxu3 %v459_v26 }
  0x48   :  { %693 = vmatpush.msra.mxu0 %v2756_v60 }
  0x49   :  { %648 = vmatpush.msrb.mxu3 %v465_v36 }
  0x4a   :  { %695 = vmatpush.msra.mxu0 %v2764_v63 }
  0x4b   :  { %652 = vmatpush.msrb.mxu3 %v471_v38 }
  0x4c   :  { %697 = vmatpush.msra.mxu0 %v2775_v3 }
  0x4d   :  { %656 = vmatpush.msrb.mxu3 %v477_v45 }
  0x4e   :  { %699 = vmatpush.msra.mxu0 %v2790_v9 }
  0x4f   :  { %660 = vmatpush.msrb.mxu3 %v483_v52 }
  0x50   :  { %701 = vmatpush.msra.mxu0 %v2807_v15 }
  0x51   :  { %664 = vmatpush.msrb.mxu3 %v489_v59 }
  0x52   :  { %703 = vmatpush.msra.mxu0 %v2821_v21 }
  0x53   :  { %668 = vmatpush.msrb.mxu3 %v495_v12 }
  0x54   :  { %705 = vmatpush.msra.mxu0 %v2831_v25 }
  0x55   :  { %672 = vmatpush.msrb.mxu3 %v501_v17 }
  0x56   :  { %707 = vmatpush.msra.mxu0 %v2845_v34 }
  0x57   :  { %676 = vmatpush.msrb.mxu3 %v507_v35 }
  0x58   :  { %709 = vmatpush.msra.mxu0 %v2861_v40 }
  0x59   :  { %680 = vmatpush.msrb.mxu3 %v513_v48 }
  0x5a   :  { %711 = vmatpush.msra.mxu0 %v2879_v47 }
  0x5b   :  { %684 = vmatpush.msrb.mxu3 %v519_v55  ;;  %v3031_v55 = vsub.f32 %v773_v49, %v3025_v50 }
  0x5c   :  { %713 = vmatpush.msra.mxu0 %v2895_v54 }
  0x5d   :  { %v817_v0 = vand.u32 4294901760, %v3031_v55 }
  0x5e   :  { %715 = vmatpush.msra.mxu0 %v2904_v58 }
  0x60   :  { %717 = vmatpush.msra.mxu0 %v2919_v10 }
  0x62   :  { %719 = vmatpush.msra.mxu0 %v2935_v22 }
  0x64   :  { %721 = vmatpush.msra.mxu0 %v2953_v41 }
  0x7a   :  { %v334_v13 = vpop.permute.xlu1 %333 }
  0x7b   :  { %v328_v60 = vpop.permute.xlu0 %327  ;;  %vm340_vm8 = vcmp.eq.s32.totalorder %v334_v13, 1 }
  0x7c   :  { %vm338_vm7 = vcmp.eq.s32.totalorder %v328_v60, 1 }
  0x82   :  { %v337_v47 = vpop.permute.xlu1 %336 }
  0x83   :  { %v331_v14 = vpop.permute.xlu0 %330  ;;  %vm341_vm9 = vcmp.eq.s32.totalorder %v337_v47, 1 }
  0x84   :  { %vm339_vm6 = vcmp.eq.s32.totalorder %v331_v14, 1  ;;  %v768_v14 = vld [vmem:[%s3975_s5 + $0x50] sm:$0xff] }
  0x9e   :  { %v147_v30 = vpop.f32.mrf.mxu0 }
  0x9f   :  { %v214_v32 = vpop.f32.mrf.mxu1 }
  0xa0   :  { %v215_v7 = vadd.f32 %v214_v32, %v147_v30  ;;  %v3042_v30 = vsub.f32 %v772_v51, %v3033_v56  ;;  %v3044_v32 = vand.u32 4294901760, %v771_v57 }
  0xa2   :  { %v3057_v60 = vsub.f32 %v771_v57, %v3044_v32  ;;  %779 = vmatpush.msra.mxu1 %v3044_v32 }
  0xa6   :  { %v304_v62 = vpop.f32.mrf.mxu2  ;;  %v149_v27 = vpop.f32.mrf.mxu0 }
  0xa7   :  { %v216_v1 = vpop.f32.mrf.mxu1  ;;  %v3007_v20 = vadd.f32 %v304_v62, %v215_v7  ;;  %v770_v62 = vld [vmem:[%s3975_s5 + $0x60] sm:$0xff] }
  0xa8   :  { %v217_v8 = vadd.f32 %v216_v1, %v149_v27  ;;  %v818_v27 = vsub.f32 %v3031_v55, %v817_v0  ;;  %v823_v1 = vand.u32 4294901760, %v3042_v30 }
  0xa9   :  { %v342_v33 = vsel %vm338_vm7, %v3007_v20, 0.0 }
  0xaa   :  { %v355_v39 = vmul.f32 %v342_v33, %v342_v33  ;;  %v824_v7 = vsub.f32 %v3042_v30, %v823_v1 }
  0xae   :  { %v306_v63 = vpop.f32.mrf.mxu2  ;;  %v152_v2 = vpop.f32.mrf.mxu0 }
  0xaf   :  { %v219_v3 = vpop.f32.mrf.mxu1  ;;  %v3004_v15 = vadd.f32 %v306_v63, %v217_v8  ;;  %v3059_v63 = vand.u32 4294901760, %v770_v62  ;;  %v829_v8 = vand.u32 4294901760, %v3057_v60 }
  0xb0   :  { %v220_v9 = vadd.f32 %v219_v3, %v152_v2  ;;  %v769_v2 = vld [vmem:[%s3975_s5 + $0x58] sm:$0xff]  ;;  %v819_v3 = vand.u32 4294901760, %v818_v27 }
  0xb1   :  { %v343_v25 = vsel %vm339_vm6, %v3004_v15, 0.0  ;;  %781 = vmatpush.msra.mxu1 %v3059_v63  ;;  %v3076_v13 = vand.u32 4294901760, %v769_v2 }
  0xb2   :  { %v356_v36 = vmul.f32 %v343_v25, %v343_v25  ;;  %v346_v40 = vadd.f32 %v343_v25, %v342_v33  ;;  %820 = vmatpush.msra.mxu2 %v819_v3  ;;  %v830_v25 = vsub.f32 %v3057_v60, %v829_v8 }
  0xb3   :  { %v3090_v33 = vsub.f32 %v769_v2, %v3076_v13  ;;  %783 = vmatpush.msra.mxu1 %v3076_v13 }
  0xb4   :  { %v359_v53 = vadd.f32 %v356_v36, %v355_v39  ;;  %v831_v36 = vand.u32 4294901760, %v830_v25 }
  0xb6   :  { %v309_v19 = vpop.f32.mrf.mxu2  ;;  %v154_v26 = vpop.f32.mrf.mxu0 }
  0xb7   :  { %v3009_v21 = vadd.f32 %v309_v19, %v220_v9  ;;  %v221_v28 = vpop.f32.mrf.mxu1  ;;  %v3072_v9 = vsub.f32 %v770_v62, %v3059_v63  ;;  %v825_v19 = vand.u32 4294901760, %v824_v7  ;;  %v761_v62 = vld [vmem:[%s3975_s5 + $0x18] sm:$0xff] }
  0xb8   :  { %v222_v38 = vadd.f32 %v221_v28, %v154_v26  ;;  %v3086_v28 = vand.u32 4294901760, %v768_v14  ;;  %v3189_v7 = vand.u32 4294901760, %v761_v62 }
  0xb9   :  { %v344_v34 = vsel %vm340_vm8, %v3009_v21, 0.0  ;;  %v835_v26 = vand.u32 4294901760, %v3072_v9  ;;  %826 = vmatpush.msra.mxu2 %v825_v19  ;;  %v760_v19 = vld [vmem:[%s3975_s5 + $0x10] sm:$0xff] }
  0xba   :  { %v357_v45 = vmul.f32 %v344_v34, %v344_v34  ;;  %v347_v54 = vadd.f32 %v346_v40, %v344_v34  ;;  %v767_v34 = vld [vmem:[%s3975_s5 + $0x48] sm:$0xff]  ;;  %v3101_v39 = vsub.f32 %v768_v14, %v3086_v28  ;;  %785 = vmatpush.msra.mxu1 %v3086_v28 }
  0xbb   :  { %v3103_v40 = vand.u32 4294901760, %v767_v34  ;;  %832 = vmatpush.msra.mxu2 %v831_v36  ;;  %v3205_v36 = vsub.f32 %v761_v62, %v3189_v7 }
  0xbc   :  { %v360_v59 = vadd.f32 %v359_v53, %v357_v45  ;;  %v841_v45 = vand.u32 4294901760, %v3090_v33  ;;  %v847_v53 = vand.u32 4294901760, %v3101_v39 }
  0xbd   :  { %787 = vmatpush.msra.mxu1 %v3103_v40 }
  0xbe   :  { %v311_v46 = vpop.f32.mrf.mxu2 }
  0xbf   :  { %v3018_v52 = vadd.f32 %v311_v46, %v222_v38  ;;  %v836_v38 = vsub.f32 %v3072_v9, %v835_v26  ;;  %v766_v46 = vld [vmem:[%s3975_s5 + $0x40] sm:$0xff] }
  0xc1   :  { %v345_v58 = vsel %vm341_vm9, %v3018_v52, 0.0  ;;  %v837_v47 = vand.u32 4294901760, %v836_v38  ;;  %v3207_v38 = vand.u32 4294901760, %v760_v19 }
  0xc2   :  { %v348_v61 = vadd.f32 %v347_v54, %v345_v58  ;;  %v358_v4 = vmul.f32 %v345_v58, %v345_v58  ;;  %v3113_v54 = vsub.f32 %v767_v34, %v3103_v40  ;;  %v3115_v58 = vand.u32 4294901760, %v766_v46 }
  0xc3   :  { %838 = vmatpush.msra.mxu2 %v837_v47  ;;  %v759_v47 = vld [vmem:[%s3975_s5 + $0x8] sm:$0xff] }
  0xc4   :  { %v349_v5 = vrot.slane %v348_v61, 4  ;;  %v361_v10 = vadd.f32 %v360_v59, %v358_v4  ;;  %v842_v59 = vsub.f32 %v3090_v33, %v841_v45  ;;  %v848_v4 = vsub.f32 %v3101_v39, %v847_v53  ;;  %789 = vmatpush.msra.mxu1 %v3115_v58 }
  0xc6   :  { %v350_v11 = vadd.f32 %v349_v5, %v348_v61  ;;  %v362_v12 = vrot.slane %v361_v10, 4  ;;  %v765_v61 = vld [vmem:[%s3975_s5 + $0x38] sm:$0xff]  ;;  %v853_v5 = vand.u32 4294901760, %v3113_v54 }
  0xc8   :  { %v351_v16 = vrot.slane %v350_v11, 2  ;;  %v363_v17 = vadd.f32 %v362_v12, %v361_v10  ;;  %v3131_v10 = vsub.f32 %v766_v46, %v3115_v58  ;;  %v843_v12 = vand.u32 4294901760, %v842_v59 }
  0xca   :  { %v352_v18 = vadd.f32 %v351_v16, %v350_v11  ;;  %v364_v22 = vrot.slane %v363_v17, 2  ;;  %v3133_v11 = vand.u32 4294901760, %v765_v61  ;;  %v764_v16 = vld [vmem:[%s3975_s5 + $0x30] sm:$0xff]  ;;  %844 = vmatpush.msra.mxu2 %v843_v12  ;;  %v3220_v12 = vsub.f32 %v760_v19, %v3207_v38 }
  0xcc   :  { %v353_v23 = vrot.slane %v352_v18, 1  ;;  %v365_v24 = vadd.f32 %v364_v22, %v363_v17  ;;  %v849_v17 = vand.u32 4294901760, %v848_v4  ;;  %v859_v22 = vand.u32 4294901760, %v3131_v10  ;;  %791 = vmatpush.msra.mxu1 %v3133_v11 }
  0xcd   :  { %v889_v4 = vand.u32 4294901760, %v3205_v36 }
  0xce   :  { %v366_v29 = vrot.slane %v365_v24, 1  ;;  %v354_v31 = vadd.f32 %v353_v23, %v352_v18  ;;  %v854_v18 = vsub.f32 %v3113_v54, %v853_v5  ;;  %v3146_v23 = vsub.f32 %v765_v61, %v3133_v11  ;;  %850 = vmatpush.msra.mxu2 %v849_v17  ;;  %v758_v17 = vld [vmem:[%s3975_s5] sm:$0xff] }
  0xd0   :  { %v367_v35 = vadd.f32 %v366_v29, %v365_v24  ;;  %v3149_v24 = vand.u32 4294901760, %v764_v16  ;;  %v763_v29 = vld [vmem:[%s3975_s5 + $0x28] sm:$0xff] }
  0xd2   :  { %v369_v37 = vsel %vm368_vm10, %v354_v31, %v367_v35  ;;  %v855_v31 = vand.u32 4294901760, %v854_v18  ;;  %v860_v35 = vsub.f32 %v3131_v10, %v859_v22  ;;  %793 = vmatpush.msra.mxu1 %v3149_v24 }
  0xd3   :  { %v418_v41 = vand.u32 4294901760, %v369_v37 }
  0xd4   :  { %856 = vmatpush.msra.mxu2 %v855_v31  ;;  %v895_v31 = vand.u32 4294901760, %v3220_v12 }
  0xd5   :  { %524 = vmatmul.f32.vlgmr.msrb.gmra.mxu0 %v418_v41  ;;  %v419_v42 = vsub.f32 %v369_v37, %v418_v41  ;;  %v865_v37 = vand.u32 4294901760, %v3146_v23 }
  0xd6   :  { %971 = vmatpush.msrb.mxu0 %v3025_v50 }
  0xd7   :  { %578 = vmatmul.f32.vlgmr.msrb.gmra.mxu1 %v419_v42  ;;  %v420_v43 = vand.u32 4294901760, %v419_v42 }
  0xd8   :  { %973 = vmatpush.msrb.mxu0 %v3033_v56 }
  0xd9   :  { %617 = vmatmul.f32.vlgmr.msrb.gmra.mxu2 %v420_v43  ;;  %v421_v44 = vsub.f32 %v419_v42, %v420_v43  ;;  %v3164_v42 = vsub.f32 %v764_v16, %v3149_v24  ;;  %v762_v43 = vld [vmem:[%s3975_s5 + $0x20] sm:$0xff]  ;;  %v3224_v16 = vand.u32 4294901760, %v759_v47 }
  0xda   :  { %975 = vmatpush.msrb.mxu0 %v3044_v32  ;;  %v3176_v51 = vand.u32 4294901760, %v762_v43 }
  0xdb   :  { %v422_v48 = vand.u32 4294901760, %v421_v44  ;;  %v861_v44 = vand.u32 4294901760, %v860_v35  ;;  %v871_v57 = vand.u32 4294901760, %v3164_v42  ;;  %v3234_v35 = vand.u32 4294901760, %v758_v17 }
  0xdc   :  { %977 = vmatpush.msrb.mxu0 %v3059_v63  ;;  %v3187_v3 = vsub.f32 %v762_v43, %v3176_v51  ;;  %v900_v43 = vsub.f32 %v759_v47, %v3224_v16 }
  0xdd   :  { %423 = vmatmul.f32.vlgmr.msra.gmra.mxu3 %v422_v48  ;;  %723 = vmatmul.f32.vlgmr.msra.gmra.mxu0 %v418_v41  ;;  %v866_v48 = vsub.f32 %v3146_v23, %v865_v37  ;;  %v872_v14 = vsub.f32 %v3164_v42, %v871_v57  ;;  %v906_v62 = vsub.f32 %v758_v17, %v3234_v35  ;;  %v2518_v17 = vld [vmem:[%s3977_s3 + $0x68] sm:$0xff] }
  0xde   :  { %918 = vmatpush.msra.mxu3 %v3031_v55  ;;  %979 = vmatpush.msrb.mxu0 %v3076_v13  ;;  %v883_v34 = vand.u32 4294901760, %v3187_v3 }
  0xdf   :  { %v867_v27 = vand.u32 4294901760, %v866_v48  ;;  %862 = vmatpush.msra.mxu2 %v861_v44  ;;  %v873_v46 = vand.u32 4294901760, %v872_v14  ;;  %v896_v48 = vsub.f32 %v3220_v12, %v895_v31  ;;  %v907_v19 = vand.u32 4294901760, %v906_v62 }
  0xe0   :  { %921 = vmatpush.msra.mxu3 %v3042_v30  ;;  %981 = vmatpush.msrb.mxu0 %v3086_v28  ;;  %v884_v61 = vsub.f32 %v3187_v3, %v883_v34 }
  0xe1   :  { %868 = vmatpush.msra.mxu2 %v867_v27  ;;  %v901_v27 = vand.u32 4294901760, %v900_v43  ;;  %v897_v14 = vand.u32 4294901760, %v896_v48  ;;  %v2524_v48 = vld [vmem:[%s3977_s3 + $0x98] sm:$0xff] }
  0xe2   :  { %924 = vmatpush.msra.mxu3 %v3057_v60  ;;  %983 = vmatpush.msrb.mxu0 %v3103_v40  ;;  %v885_v18 = vand.u32 4294901760, %v884_v61  ;;  %v2510_v61 = vld [vmem:[%s3977_s3 + $0x28] sm:$0xff] }
  0xe3   :  { %874 = vmatpush.msra.mxu2 %v873_v46  ;;  %v908_v46 = vsub.f32 %v906_v62, %v907_v19 }
  0xe4   :  { %927 = vmatpush.msra.mxu3 %v3072_v9  ;;  %985 = vmatpush.msrb.mxu0 %v3115_v58 }
  0xe5   :  { %686 = vmatmul.f32.vlgmr.msrb.gmra.mxu3 %v418_v41  ;;  %v3159_v41 = vand.u32 4294901760, %v763_v29 }
  0xe6   :  { %930 = vmatpush.msra.mxu3 %v3090_v33  ;;  %987 = vmatpush.msrb.mxu0 %v3133_v11 }
  0xe7   :  { %v3174_v49 = vsub.f32 %v763_v29, %v3159_v41  ;;  %795 = vmatpush.msra.mxu1 %v3159_v41  ;;  %v890_v29 = vsub.f32 %v3205_v36, %v889_v4 }
  0xe8   :  { %933 = vmatpush.msra.mxu3 %v3101_v39  ;;  %989 = vmatpush.msrb.mxu0 %v3149_v24 }
  0xe9   :  { %v877_v2 = vand.u32 4294901760, %v3174_v49  ;;  %797 = vmatpush.msra.mxu1 %v3176_v51  ;;  %v891_v44 = vand.u32 4294901760, %v890_v29  ;;  %v2508_v29 = vld [vmem:[%s3977_s3 + $0x18] sm:$0xff] }
  0xea   :  { %936 = vmatpush.msra.mxu3 %v3113_v54  ;;  %991 = vmatpush.msrb.mxu0 %v3159_v41 }
  0xeb   :  { %v878_v25 = vsub.f32 %v3174_v49, %v877_v2  ;;  %799 = vmatpush.msra.mxu1 %v3189_v7 }
  0xec   :  { %939 = vmatpush.msra.mxu3 %v3131_v10  ;;  %993 = vmatpush.msrb.mxu0 %v3176_v51 }
  0xed   :  { %v879_v59 = vand.u32 4294901760, %v878_v25  ;;  %801 = vmatpush.msra.mxu1 %v3207_v38  ;;  %v902_v25 = vsub.f32 %v900_v43, %v901_v27 }
  0xee   :  { %942 = vmatpush.msra.mxu3 %v3146_v23  ;;  %995 = vmatpush.msrb.mxu0 %v3189_v7  ;;  %v748_v23 = vld [vmem:[%s3976_s7] sm:$0x1] }
  0xef   :  { %880 = vmatpush.msra.mxu2 %v879_v59  ;;  %803 = vmatpush.msra.mxu1 %v3224_v16  ;;  %v903_v47 = vand.u32 4294901760, %v902_v25  ;;  %v909_v59 = vand.u32 4294901760, %v908_v46  ;;  %v2514_v25 = vld [vmem:[%s3977_s3 + $0x48] sm:$0xff] }
  0xf0   :  { %945 = vmatpush.msra.mxu3 %v3164_v42  ;;  %997 = vmatpush.msrb.mxu0 %v3207_v38  ;;  %v2522_v46 = vld [vmem:[%s3977_s3 + $0x88] sm:$0xff] }
  0xf1   :  { %886 = vmatpush.msra.mxu2 %v885_v18  ;;  %805 = vmatpush.msra.mxu1 %v3234_v35  ;;  %v2526_v18 = vld [vmem:[%s3977_s3 + $0xa8] sm:$0xff] }
  0xf2   :  { %948 = vmatpush.msra.mxu3 %v3174_v49  ;;  %999 = vmatpush.msrb.mxu0 %v3224_v16 }
  0xf3   :  { %1012 = vmatpush.msrb.mxu1 %v817_v0  ;;  %892 = vmatpush.msra.mxu2 %v891_v44  ;;  %v2516_v44 = vld [vmem:[%s3977_s3 + $0x58] sm:$0xff] }
  0xf4   :  { %951 = vmatpush.msra.mxu3 %v3187_v3  ;;  %1001 = vmatpush.msrb.mxu0 %v3234_v35 }
  0xf5   :  { %1016 = vmatpush.msrb.mxu1 %v823_v1  ;;  %898 = vmatpush.msra.mxu2 %v897_v14  ;;  %v2523_v14 = vld [vmem:[%s3977_s3 + $0x90] sm:$0xff] }
  0xf6   :  { %954 = vmatpush.msra.mxu3 %v3205_v36  ;;  %v2520_v36 = vld [vmem:[%s3977_s3 + $0x78] sm:$0xff] }
  0xf7   :  { %1020 = vmatpush.msrb.mxu1 %v829_v8  ;;  %904 = vmatpush.msra.mxu2 %v903_v47  ;;  %v2543_v47 = vmov 0.0  }
  0xf8   :  { %957 = vmatpush.msra.mxu3 %v3220_v12  ;;  %v2527_v12 = vld [vmem:[%s3977_s3 + $0xb0] sm:$0xff]  ;;  %1133 = vst [vmem:[#allocation2 + $0x20] sm:$0xff] %v2543_v47 }
  0xf9   :  { %1024 = vmatpush.msrb.mxu1 %v835_v26  ;;  %910 = vmatpush.msra.mxu2 %v909_v59  ;;  %v2513_v59 = vld [vmem:[%s3977_s3 + $0x40] sm:$0xff] }
  0xfa   :  { %960 = vmatpush.msra.mxu3 %v900_v43  ;;  %v2507_v43 = vld [vmem:[%s3977_s3 + $0x10] sm:$0xff] }
  0xfb   :  { %1079 = vmatpush.msrb.mxu2 %v3025_v50  ;;  %1028 = vmatpush.msrb.mxu1 %v841_v45 }
  0xfc   :  { %963 = vmatpush.msra.mxu3 %v906_v62  ;;  %v2506_v62 = vld [vmem:[%s3977_s3 + $0x8] sm:$0xff] }
  0xfd   :  { %1081 = vmatpush.msrb.mxu2 %v3033_v56  ;;  %1032 = vmatpush.msrb.mxu1 %v847_v53 }
  0xfe   :  { %1227 = vmatpush.bf16.msrb.mxu3 %v2520_v36 }
  0xff   :  { %1083 = vmatpush.msrb.mxu2 %v3044_v32  ;;  %1036 = vmatpush.msrb.mxu1 %v853_v5 }
 0x101   :  { %1085 = vmatpush.msrb.mxu2 %v3059_v63  ;;  %1040 = vmatpush.msrb.mxu1 %v859_v22 }
 0x103   :  { %1087 = vmatpush.msrb.mxu2 %v3076_v13  ;;  %1044 = vmatpush.msrb.mxu1 %v865_v37 }
 0x105   :  { %1089 = vmatpush.msrb.mxu2 %v3086_v28  ;;  %1048 = vmatpush.msrb.mxu1 %v871_v57 }
 0x107   :  { %1091 = vmatpush.msrb.mxu2 %v3103_v40  ;;  %1052 = vmatpush.msrb.mxu1 %v877_v2 }
 0x109   :  { %1093 = vmatpush.msrb.mxu2 %v3115_v58  ;;  %1056 = vmatpush.msrb.mxu1 %v883_v34  ;;  %v2534_v58 = vld [vmem:[%s3974_s6] ss:$0 sm:$0xff]  ;;  %v2511_v34 = vld [vmem:[%s3977_s3 + $0x30] sm:$0xff] }
 0x10b   :  { %1095 = vmatpush.msrb.mxu2 %v3133_v11  ;;  %1060 = vmatpush.msrb.mxu1 %v889_v4  ;;  %v2519_v4 = vld [vmem:[%s3977_s3 + $0x70] sm:$0xff] }
 0x10c   :  { %1228 = vmatpush.bf16.msrb.mxu3 %v2519_v4 }
 0x10d   :  { %1097 = vmatpush.msrb.mxu2 %v3149_v24  ;;  %1064 = vmatpush.msrb.mxu1 %v895_v31  ;;  %v2517_v31 = vld [vmem:[%s3977_s3 + $0x60] sm:$0xff] }
 0x10f   :  { %1099 = vmatpush.msrb.mxu2 %v3159_v41  ;;  %1068 = vmatpush.msrb.mxu1 %v901_v27  ;;  %v2515_v27 = vld [vmem:[%s3977_s3 + $0x50] sm:$0xff] }
 0x110   :  { %1229 = vmatpush.bf16.msrb.mxu3 %v2518_v17 }
 0x111   :  { %1101 = vmatpush.msrb.mxu2 %v3176_v51  ;;  %1072 = vmatpush.msrb.mxu1 %v907_v19  ;;  %v2505_v19 = vld [vmem:[%s3977_s3] sm:$0xff] }
 0x113   :  { %1103 = vmatpush.msrb.mxu2 %v3189_v7  ;;  %v2512_v7 = vld [vmem:[%s3977_s3 + $0x38] sm:$0xff] }
 0x114   :  { %1294 = vmatpush.bf16.msra.mxu0 %v2512_v7  ;;  %1230 = vmatpush.bf16.msrb.mxu3 %v2517_v31 }
 0x115   :  { %1105 = vmatpush.msrb.mxu2 %v3207_v38  ;;  %v2528_v38 = vld [vmem:[%s3977_s3 + $0xb8] sm:$0xff] }
 0x117   :  { %1107 = vmatpush.msrb.mxu2 %v3224_v16  ;;  %v2509_v16 = vld [vmem:[%s3977_s3 + $0x20] sm:$0xff] }
 0x118   :  { %1295 = vmatpush.bf16.msra.mxu0 %v2511_v34  ;;  %1231 = vmatpush.bf16.msrb.mxu3 %v2516_v44 }
 0x119   :  { %1109 = vmatpush.msrb.mxu2 %v3234_v35  ;;  %v2525_v35 = vld [vmem:[%s3977_s3 + $0xa0] sm:$0xff] }
 0x11c   :  { %1296 = vmatpush.bf16.msra.mxu0 %v2510_v61  ;;  %1232 = vmatpush.bf16.msrb.mxu3 %v2515_v27 }
 0x120   :  { %1297 = vmatpush.bf16.msra.mxu0 %v2509_v16  ;;  %1233 = vmatpush.bf16.msrb.mxu3 %v2514_v25 }
 0x124   :  { %1298 = vmatpush.bf16.msra.mxu0 %v2508_v29  ;;  %1234 = vmatpush.bf16.msrb.mxu3 %v2513_v59 }
 0x128   :  { %1299 = vmatpush.bf16.msra.mxu0 %v2507_v43  ;;  %v1470_v43 = vld [vmem:[%s3978_s8 + $0x60] sm:$0xff] }
 0x129   :  { %v3420_v27 = vand.u32 4294901760, %v1470_v43 }
 0x12b   :  { %v3433_v47 = vsub.f32 %v1470_v43, %v3420_v27 }
 0x12c   :  { %1300 = vmatpush.bf16.msra.mxu0 %v2506_v62 }
 0x130   :  { %1301 = vmatpush.bf16.msra.mxu0 %v2505_v19 }
 0x152   :  { %v525_v55 = vpop.f32.mrf.mxu0 }
 0x154   :  { %v579_v1 = vpop.f32.mrf.mxu1 }
 0x15a   :  { %v724_v9 = vpop.f32.mrf.mxu0 }
 0x15c   :  { %v618_v50 = vpop.f32.mrf.mxu2 }
 0x160   :  { %v424_v0 = vpop.f32.mrf.mxu3 }
 0x161   :  { %v526_v30 = vadd.f32 %v525_v55, %v424_v0  ;;  %v2521_v55 = vld [vmem:[%s3977_s3 + $0x80] sm:$0xff] }
 0x163   :  { %v580_v60 = vadd.f32 %v579_v1, %v526_v30 }
 0x165   :  { %v619_v56 = vadd.f32 %v618_v50, %v580_v60 }
 0x168   :  { %v687_v8 = vpop.f32.mrf.mxu3 }
 0x169   :  { %v688_v32 = vadd.f32 %v687_v8, %v619_v56 }
 0x16b   :  { %v725_v63 = vadd.f32 %v724_v9, %v688_v32 }
 0x16d   :  { %v727_v13 = vmul.f32 %v725_v63, %v725_v63 }
 0x16f   :  { %v729_v26 = vrot.slane %v727_v13, 7 }
 0x171   :  { %v731_v28 = vsub.f32 %v725_v63, %v729_v26 }
 0x173   :  { %v732_v33 = vadd.f32 1e-05, %v731_v28 }
 0x175   :  { %2536 = vrsqrt.f32 %v732_v33  ;;  %vm739_vm12 = vweird.f32 %v732_v33 }
 0x17b   :  { %v2537_v39 = vpop.eup %2536 }
 0x17c   :  { %v734_v40 = vmul.f32 %v2537_v39, %v732_v33  ;;  %vm740_vm11 = vweird.f32 %v2537_v39 }
 0x17d   :  { %vm741_vm13 = vmor %vm739_vm12, %vm740_vm11 }
 0x17e   :  { %v735_v45 = vmul.f32 %v2537_v39, %v734_v40 }
 0x180   :  { %v736_v53 = vmul.f32 0.5, %v735_v45 }
 0x182   :  { %v737_v54 = vsub.f32 1.5, %v736_v53 }
 0x184   :  { %v738_v5 = vmul.f32 %v2537_v39, %v737_v54 }
 0x186   :  { %v742_v10 = vsel %vm741_vm13, %v2537_v39, %v738_v5 }
 0x187   :  { %v747_v11 = vmul.f32 %v2534_v58, %v742_v10  ;;  %v2540_v10 = vld [vmem:[%s3971_s1] sm:$0xff] }
 0x188   :  { %vm1407_vm14 = vcmp.lt.s32.totalorder %v2540_v10, 12 }
 0x189   :  { %v750_v22 = vrot.slane %v747_v11, 1 }
 0x18b   :  { %v752_v24 = vmul.f32 %v750_v22, %v725_v63 }
 0x18d   :  { %v753_v37 = vsub.f32 %v748_v23, %v752_v24 }
 0x18f   :  { %v755_v41 = vperm.slane %v753_v37, 0 }
 0x191   :  { %v757_v42 = vsel %vm368_vm10, %v750_v22, %v755_v41 }
 0x192   :  { %v806_v49 = vand.u32 4294901760, %v757_v42 }
 0x194   :  { %912 = vmatmul.f32.vlgmr.msra.gmra.mxu2 %v806_v49  ;;  %v807_v51 = vsub.f32 %v757_v42, %v806_v49 }
 0x196   :  { %966 = vmatmul.f32.vlgmr.msra.gmra.mxu3 %v807_v51  ;;  %v808_v57 = vand.u32 4294901760, %v807_v51 }
 0x198   :  { %1005 = vmatmul.f32.vlgmr.msrb.gmra.mxu0 %v808_v57  ;;  %v809_v2 = vsub.f32 %v807_v51, %v808_v57 }
 0x19a   :  { %v810_v3 = vand.u32 4294901760, %v809_v2 }
 0x19c   :  { %811 = vmatmul.f32.vlgmr.msra.gmra.mxu1 %v810_v3  ;;  %1111 = vmatmul.f32.vlgmr.msrb.gmra.mxu2 %v806_v49 }
 0x19d   :  { %1384 = vmatpush.bf16.msra.mxu1 %v2528_v38 }
 0x1a1   :  { %1385 = vmatpush.bf16.msra.mxu1 %v2527_v12  ;;  %v1472_v12 = vld [vmem:[%s3978_s8 + $0x70] sm:$0xff] }
 0x1a2   :  { %v3394_v17 = vand.u32 4294901760, %v1472_v12 }
 0x1a4   :  { %1074 = vmatmul.f32.vlgmr.msrb.gmra.mxu1 %v806_v49  ;;  %v3403_v31 = vsub.f32 %v1472_v12, %v3394_v17 }
 0x1a5   :  { %1386 = vmatpush.bf16.msra.mxu1 %v2526_v18  ;;  %v1471_v18 = vld [vmem:[%s3978_s8 + $0x68] sm:$0xff] }
 0x1a9   :  { %1387 = vmatpush.bf16.msra.mxu1 %v2525_v35  ;;  %v3405_v35 = vand.u32 4294901760, %v1471_v18 }
 0x1ab   :  { %v3418_v62 = vsub.f32 %v1471_v18, %v3405_v35 }
 0x1ad   :  { %1388 = vmatpush.bf16.msra.mxu1 %v2524_v48  ;;  %v1523_v48 = vand.u32 4294901760, %v3403_v31 }
 0x1af   :  { %v1524_v25 = vsub.f32 %v3403_v31, %v1523_v48 }
 0x1b1   :  { %1389 = vmatpush.bf16.msra.mxu1 %v2523_v14  ;;  %v1469_v14 = vld [vmem:[%s3978_s8 + $0x58] sm:$0xff] }
 0x1b2   :  { %v3437_v59 = vand.u32 4294901760, %v1469_v14 }
 0x1b5   :  { %1390 = vmatpush.bf16.msra.mxu1 %v2522_v46  ;;  %v1529_v46 = vand.u32 4294901760, %v3418_v62 }
 0x1b9   :  { %1391 = vmatpush.bf16.msra.mxu1 %v2521_v55  ;;  %v1468_v55 = vld [vmem:[%s3978_s8 + $0x50] sm:$0xff] }
 0x215   :  { %v1006_v56 = vpop.f32.mrf.mxu0 }
 0x217   :  { %v913_v0 = vpop.f32.mrf.mxu2 }
 0x219   :  { %v812_v30 = vpop.f32.mrf.mxu1  ;;  %v967_v60 = vpop.f32.mrf.mxu3 }
 0x21a   :  { %v914_v1 = vadd.f32 %v913_v0, %v812_v30  ;;  %v1525_v0 = vand.u32 4294901760, %v1524_v25  ;;  %v1530_v30 = vsub.f32 %v3418_v62, %v1529_v46 }
 0x21c   :  { %v968_v50 = vadd.f32 %v967_v60, %v914_v1  ;;  %v1535_v1 = vand.u32 4294901760, %v3433_v47  ;;  %v3447_v60 = vand.u32 4294901760, %v1468_v55 }
 0x21e   :  { %v1007_v8 = vadd.f32 %v1006_v56, %v968_v50  ;;  %v3451_v50 = vsub.f32 %v1469_v14, %v3437_v59  ;;  %v1467_v56 = vld [vmem:[%s3978_s8 + $0x48] sm:$0xff] }
 0x21f   :  { %v1112_v63 = vpop.f32.mrf.mxu2 }
 0x221   :  { %v1075_v32 = vpop.f32.mrf.mxu1 }
 0x222   :  { %v1076_v9 = vadd.f32 %v1075_v32, %v1007_v8  ;;  %v1531_v8 = vand.u32 4294901760, %v1530_v30  ;;  %v1536_v32 = vsub.f32 %v3433_v47, %v1535_v1  ;;  %v1459_v30 = vld [vmem:[%s3978_s8 + $0x8] sm:$0xff] }
 0x224   :  { %v1113_v13 = vadd.f32 %v1112_v63, %v1076_v9  ;;  %v3462_v9 = vsub.f32 %v1468_v55, %v3447_v60  ;;  %v3464_v63 = vand.u32 4294901760, %v1467_v56 }
 0x226   :  { %v1115_v26 = vperm.slane %v1113_v13, 0  ;;  %v1120_v28 = vperm.slane %v1113_v13, 1  ;;  %v1541_v13 = vand.u32 4294901760, %v3451_v50 }
 0x228   :  { %v1116_v33 = vmul.f32 %v1115_v26, %v3007_v20  ;;  %v1117_v39 = vmul.f32 %v1115_v26, %v3004_v15  ;;  %v1118_v40 = vmul.f32 %v1115_v26, %v3009_v21  ;;  %v1119_v45 = vmul.f32 %v1115_v26, %v3018_v52  ;;  %v2541_v21 = vld [vmem:[%s3971_s1 + $0x8] sm:$0xff]  ;;  %v1466_v26 = vld [vmem:[%s3978_s8 + $0x40] sm:$0xff] }
 0x229   :  { %v1411_v20 = vsel %vm1407_vm14, 1, %v2542_v6  ;;  %vm1408_vm15 = vcmp.lt.s32.totalorder %v2541_v21, 12 }
 0x22a   :  { %v1121_v53 = vadd.f32 %v1120_v28, %v1116_v33  ;;  %v1122_v54 = vadd.f32 %v1120_v28, %v1117_v39  ;;  %v1123_v58 = vadd.f32 %v1120_v28, %v1118_v40  ;;  %v1124_v5 = vadd.f32 %v1120_v28, %v1119_v45  ;;  %1416 = vperm.xlu2 %2533, %v1411_v20  }
 0x22b   :  { %v1412_v52 = vsel %vm1408_vm15, 1, %v2542_v6  ;;  %v1473_v6 = vld [vmem:[%s3978_s8 + $0x78] sm:$0xff]  ;;  %v1537_v28 = vand.u32 4294901760, %v1536_v32  ;;  %v1547_v33 = vand.u32 4294901760, %v3462_v9  ;;  %v3474_v39 = vsub.f32 %v1467_v56, %v3464_v63 }
 0x22c   :  { %v1125_v11 = vmax.f32 %v1121_v53, 0.0  ;;  %v1126_v22 = vmax.f32 %v1122_v54, 0.0  ;;  %v1127_v23 = vmax.f32 %v1123_v58, 0.0  ;;  %v1128_v24 = vmax.f32 %v1124_v5, 0.0  ;;  %v1465_v53 = vld [vmem:[%s3978_s8 + $0x38] sm:$0xff] }
 0x22d   :  { %v3386_v4 = vand.u32 4294901760, %v1473_v6  ;;  %v3476_v40 = vand.u32 4294901760, %v1466_v26  ;;  %v1542_v45 = vsub.f32 %v3451_v50, %v1541_v13  ;;  %v1548_v54 = vsub.f32 %v3462_v9, %v1547_v33 }
 0x22e   :  { %1129 = vst [vmem:[#allocation2] sm:$0xff] %v1125_v11  ;;  %v1138_v15 = vpack.c.bf16 %v1126_v22, %v1125_v11  ;;  %v1139_v2 = vpack.c.bf16 %v1128_v24, %v1127_v23  ;;  %v1553_v58 = vand.u32 4294901760, %v3474_v39  ;;  %v3494_v10 = vand.u32 4294901760, %v1465_v53 }
 0x22f   :  { %1130 = vst [vmem:[#allocation2 + $0x8] sm:$0xff] %v1126_v22  ;;  %v3392_v16 = vsub.f32 %v1473_v6, %v3386_v4  ;;  %1475 = vmatpush.msra.mxu2 %v3386_v4  ;;  %1671 = vmatpush.msrb.mxu1 %v3386_v4  ;;  %v3492_v5 = vsub.f32 %v1466_v26, %v3476_v40  ;;  %v1543_v11 = vand.u32 4294901760, %v1542_v45  ;;  %v1464_v22 = vld [vmem:[%s3978_s8 + $0x30] sm:$0xff]  ;;  %v1458_v45 = vld [vmem:[%s3978_s8] sm:$0xff] }
 0x230   :  { %1131 = vst [vmem:[#allocation2 + $0x10] sm:$0xff] %v1127_v23  ;;  %1302 = vmatmul.bf16.vlgmr.msra.gmra.mxu0 %v1138_v15  ;;  %v1549_v23 = vand.u32 4294901760, %v1548_v54  ;;  %v3507_v15 = vsub.f32 %v1465_v53, %v3494_v10  ;;  %v3510_v21 = vand.u32 4294901760, %v1464_v22 }
 0x231   :  { %1132 = vst [vmem:[#allocation2 + $0x18] sm:$0xff] %v1128_v24  ;;  %v1517_v29 = vand.u32 4294901760, %v3392_v16  ;;  %1477 = vmatpush.msra.mxu2 %v3394_v17  ;;  %1618 = vmatpush.msrb.mxu0 %v3392_v16  ;;  %v1554_v24 = vsub.f32 %v3474_v39, %v1553_v58  ;;  %v1559_v20 = vand.u32 4294901760, %v3492_v5 }
 0x232   :  { %1419 = vperm.xlu2 %2533, %v1412_v52   ;;  %1673 = vmatpush.msrb.mxu1 %v3394_v17  ;;  %v1463_v52 = vld [vmem:[%s3978_s8 + $0x28] sm:$0xff] }
 0x233   :  { %v1518_v44 = vsub.f32 %v3392_v16, %v1517_v29  ;;  %1479 = vmatpush.msra.mxu2 %v3405_v35  ;;  %1621 = vmatpush.msrb.mxu0 %v3403_v31 }
 0x234   :  { %1675 = vmatpush.msrb.mxu1 %v3405_v35 }
 0x235   :  { %v1519_v19 = vand.u32 4294901760, %v1518_v44  ;;  %1481 = vmatpush.msra.mxu2 %v3420_v27  ;;  %1624 = vmatpush.msrb.mxu0 %v3418_v62  ;;  %v1460_v44 = vld [vmem:[%s3978_s8 + $0x10] sm:$0xff] }
 0x236   :  { %v1156_v37 = vld [vmem:[#allocation2 + $0x1] sm:$0xff]  ;;  %1677 = vmatpush.msrb.mxu1 %v3420_v27  ;;  %v3568_v55 = vand.u32 4294901760, %v1460_v44 }
 0x237   :  { %v1313_v41 = vld [vmem:[#allocation2 + $0x2] sm:$0xff]  ;;  %v1314_v49 = vld [vmem:[#allocation2 + $0xa] sm:$0xff]  ;;  %1520 = vmatpush.msra.mxu3 %v1519_v19  ;;  %1627 = vmatpush.msrb.mxu0 %v3433_v47 }
 0x238   :  { %v1157_v42 = vld [vmem:[#allocation2 + $0x9] sm:$0xff]  ;;  %v1317_v57 = vpack.c.bf16 %v1314_v49, %v1313_v41  ;;  %v1158_v3 = vld [vmem:[#allocation2 + $0x11] sm:$0xff]  ;;  %v1159_v7 = vld [vmem:[#allocation2 + $0x19] sm:$0xff]  ;;  %1483 = vmatpush.msra.mxu2 %v3437_v59  ;;  %1679 = vmatpush.msrb.mxu1 %v3437_v59  ;;  %v1560_v41 = vsub.f32 %v3492_v5, %v1559_v20  ;;  %v3520_v49 = vand.u32 4294901760, %v1463_v52  ;;  %v3581_v26 = vsub.f32 %v1460_v44, %v3568_v55 }
 0x239   :  { %v1160_v51 = vpack.c.bf16 %v1157_v42, %v1156_v37  ;;  %v1315_v34 = vld [vmem:[#allocation2 + $0x12] sm:$0xff]  ;;  %v1316_v36 = vld [vmem:[#allocation2 + $0x1a] sm:$0xff]  ;;  %v1161_v38 = vpack.c.bf16 %v1159_v7, %v1158_v3  ;;  %1526 = vmatpush.msra.mxu3 %v1525_v0  ;;  %1630 = vmatpush.msrb.mxu0 %v3451_v50  ;;  %v1555_v37 = vand.u32 4294901760, %v1554_v24  ;;  %v1565_v42 = vand.u32 4294901760, %v3507_v15 }
 0x23a   :  { %1392 = vmatmul.bf16.vlgmr.msra.gmra.mxu1 %v1317_v57  ;;  %v1318_v61 = vpack.c.bf16 %v1316_v36, %v1315_v34  ;;  %1485 = vmatpush.msra.mxu2 %v3447_v60  ;;  %v1462_v57 = vld [vmem:[%s3978_s8 + $0x20] sm:$0xff]  ;;  %v3535_v7 = vsub.f32 %v1463_v52, %v3520_v49 }
 0x23b   :  { %1235 = vmatmul.bf16.vlgmr.msrb.gmra.mxu3 %v1160_v51  ;;  %1681 = vmatpush.msrb.mxu1 %v3447_v60  ;;  %v3525_v51 = vsub.f32 %v1464_v22, %v3510_v21  ;;  %v1566_v3 = vsub.f32 %v3507_v15, %v1565_v42  ;;  %v3537_v34 = vand.u32 4294901760, %v1462_v57  ;;  %v3595_v22 = vand.u32 4294901760, %v1458_v45 }
 0x23c   :  { %1532 = vmatpush.msra.mxu3 %v1531_v8  ;;  %1487 = vmatpush.msra.mxu2 %v3464_v63  ;;  %v1577_v6 = vand.u32 4294901760, %v3535_v7 }
 0x23d   :  { %1633 = vmatpush.msrb.mxu0 %v3462_v9  ;;  %1683 = vmatpush.msrb.mxu1 %v3464_v63  ;;  %v1571_v36 = vand.u32 4294901760, %v3525_v51  ;;  %v3548_v12 = vsub.f32 %v1462_v57, %v3537_v34  ;;  %v1423_v9 = vpop.permute.xlu0 %1422 }
 0x23e   :  { %1538 = vmatpush.msra.mxu3 %v1537_v28  ;;  %1489 = vmatpush.msra.mxu2 %v3476_v40  ;;  %v1578_v14 = vsub.f32 %v3535_v7, %v1577_v6  ;;  %v3585_v28 = vand.u32 4294901760, %v1459_v30  ;;  %vm1429_vm2 = vcmp.eq.s32.totalorder %v1423_v9, 1 }
 0x23f   :  { %1636 = vmatpush.msrb.mxu0 %v3474_v39  ;;  %1685 = vmatpush.msrb.mxu1 %v3476_v40  ;;  %v1572_v43 = vsub.f32 %v3525_v51, %v1571_v36  ;;  %v1583_v19 = vand.u32 4294901760, %v3548_v12 }
 0x240   :  { %1307 = vmatmul.bf16.gmra.mxu0 %v1139_v2  ;;  %1544 = vmatpush.msra.mxu3 %v1543_v11  ;;  %v1561_v2 = vand.u32 4294901760, %v1560_v41  ;;  %v1579_v56 = vand.u32 4294901760, %v1578_v14  ;;  %v1595_v11 = vand.u32 4294901760, %v3581_v26 }
 0x241   :  { %1491 = vmatpush.msra.mxu2 %v3494_v10  ;;  %1639 = vmatpush.msrb.mxu0 %v3492_v5  ;;  %v1573_v0 = vand.u32 4294901760, %v1572_v43  ;;  %v1584_v8 = vsub.f32 %v3548_v12, %v1583_v19 }
 0x242   :  { %1687 = vmatpush.msrb.mxu1 %v3494_v10  ;;  %1550 = vmatpush.msra.mxu3 %v1549_v23  ;;  %v3600_v23 = vsub.f32 %v1459_v30, %v3585_v28  ;;  %v1596_v52 = vsub.f32 %v3581_v26, %v1595_v11 }
 0x243   :  { %1493 = vmatpush.msra.mxu2 %v3510_v21  ;;  %1642 = vmatpush.msrb.mxu0 %v3507_v15  ;;  %v1585_v53 = vand.u32 4294901760, %v1584_v8 }
 0x244   :  { %1689 = vmatpush.msrb.mxu1 %v3510_v21  ;;  %1556 = vmatpush.msra.mxu3 %v1555_v37  ;;  %v3605_v37 = vsub.f32 %v1458_v45, %v3595_v22  ;;  %v1601_v41 = vand.u32 4294901760, %v3600_v23  ;;  %v1597_v57 = vand.u32 4294901760, %v1596_v52 }
 0x245   :  { %1495 = vmatpush.msra.mxu2 %v3520_v49  ;;  %1645 = vmatpush.msrb.mxu0 %v3525_v51 }
 0x246   :  { %1691 = vmatpush.msrb.mxu1 %v3520_v49  ;;  %1562 = vmatpush.msra.mxu3 %v1561_v2  ;;  %v1607_v2 = vand.u32 4294901760, %v3605_v37 }
 0x247   :  { %1497 = vmatpush.msra.mxu2 %v3537_v34  ;;  %1648 = vmatpush.msrb.mxu0 %v3535_v7 }
 0x248   :  { %1693 = vmatpush.msrb.mxu1 %v3537_v34 }
 0x249   :  { %1651 = vmatpush.msrb.mxu0 %v3548_v12 }
 0x24a   :  { %1397 = vmatmul.bf16.gmra.mxu1 %v1318_v61  ;;  %v1567_v61 = vand.u32 4294901760, %v1566_v3  ;;  %v1602_v3 = vsub.f32 %v3600_v23, %v1601_v41 }
 0x24b   :  { %1240 = vmatmul.bf16.gmra.mxu3 %v1161_v38  ;;  %v1461_v38 = vld [vmem:[%s3978_s8 + $0x18] sm:$0xff] }
 0x24c   :  { %v3550_v18 = vand.u32 4294901760, %v1461_v38  ;;  %1568 = vmatpush.msra.mxu3 %v1567_v61  ;;  %v1603_v61 = vand.u32 4294901760, %v1602_v3 }
 0x24e   :  { %v3566_v25 = vsub.f32 %v1461_v38, %v3550_v18  ;;  %1499 = vmatpush.msra.mxu2 %v3550_v18  ;;  %1695 = vmatpush.msrb.mxu1 %v3550_v18  ;;  %v1608_v38 = vsub.f32 %v3605_v37, %v1607_v2 }
 0x24f   :  { %1574 = vmatpush.msra.mxu3 %v1573_v0 }
 0x250   :  { %v1589_v32 = vand.u32 4294901760, %v3566_v25  ;;  %1501 = vmatpush.msra.mxu2 %v3568_v55  ;;  %1654 = vmatpush.msrb.mxu0 %v3566_v25  ;;  %v1609_v43 = vand.u32 4294901760, %v1608_v38  ;;  %v1859_v38 = vld [vmem:[%s3980_s9 + $0x68] sm:$0xff] }
 0x251   :  { %1697 = vmatpush.msrb.mxu1 %v3568_v55  ;;  %1580 = vmatpush.msra.mxu3 %v1579_v56 }
 0x252   :  { %v1590_v54 = vsub.f32 %v3566_v25, %v1589_v32  ;;  %1503 = vmatpush.msra.mxu2 %v3585_v28  ;;  %1657 = vmatpush.msrb.mxu0 %v3581_v26 }
 0x253   :  { %1699 = vmatpush.msrb.mxu1 %v3585_v28  ;;  %1586 = vmatpush.msra.mxu3 %v1585_v53 }
 0x254   :  { %v1591_v24 = vand.u32 4294901760, %v1590_v54  ;;  %1505 = vmatpush.msra.mxu2 %v3595_v22  ;;  %1660 = vmatpush.msrb.mxu0 %v3600_v23 }
 0x255   :  { %1701 = vmatpush.msrb.mxu1 %v3595_v22 }
 0x256   :  { %1712 = vmatpush.msrb.mxu2 %v1517_v29  ;;  %1592 = vmatpush.msra.mxu3 %v1591_v24 }
 0x257   :  { %1663 = vmatpush.msrb.mxu0 %v3605_v37  ;;  %v1861_v37 = vld [vmem:[%s3980_s9 + $0x78] sm:$0xff] }
 0x258   :  { %1716 = vmatpush.msrb.mxu2 %v1523_v48  ;;  %1598 = vmatpush.msra.mxu3 %v1597_v57  ;;  %v1860_v57 = vld [vmem:[%s3980_s9 + $0x70] sm:$0xff] }
 0x259   :  { %v3683_v3 = vand.u32 4294901760, %v1860_v57 }
 0x25a   :  { %1720 = vmatpush.msrb.mxu2 %v1529_v46  ;;  %1604 = vmatpush.msra.mxu3 %v1603_v61 }
 0x25c   :  { %1724 = vmatpush.msrb.mxu2 %v1535_v1  ;;  %1610 = vmatpush.msra.mxu3 %v1609_v43  ;;  %v3692_v43 = vsub.f32 %v1860_v57, %v3683_v3 }
 0x25e   :  { %1779 = vmatpush.msrb.mxu3 %v3386_v4  ;;  %1728 = vmatpush.msrb.mxu2 %v1541_v13 }
 0x260   :  { %1781 = vmatpush.msrb.mxu3 %v3394_v17  ;;  %1732 = vmatpush.msrb.mxu2 %v1547_v33 }
 0x262   :  { %1783 = vmatpush.msrb.mxu3 %v3405_v35  ;;  %1736 = vmatpush.msrb.mxu2 %v1553_v58 }
 0x264   :  { %1785 = vmatpush.msrb.mxu3 %v3420_v27  ;;  %1740 = vmatpush.msrb.mxu2 %v1559_v20  ;;  %v1426_v20 = vpop.permute.xlu1 %1425 }
 0x265   :  { %vm1430_vm3 = vcmp.eq.s32.totalorder %v1426_v20, 1 }
 0x266   :  { %1787 = vmatpush.msrb.mxu3 %v3437_v59  ;;  %1744 = vmatpush.msrb.mxu2 %v1565_v42 }
 0x268   :  { %1789 = vmatpush.msrb.mxu3 %v3447_v60  ;;  %1748 = vmatpush.msrb.mxu2 %v1571_v36 }
 0x26a   :  { %1791 = vmatpush.msrb.mxu3 %v3464_v63  ;;  %1752 = vmatpush.msrb.mxu2 %v1577_v6 }
 0x26c   :  { %1793 = vmatpush.msrb.mxu3 %v3476_v40  ;;  %1756 = vmatpush.msrb.mxu2 %v1583_v19 }
 0x26e   :  { %1795 = vmatpush.msrb.mxu3 %v3494_v10  ;;  %1760 = vmatpush.msrb.mxu2 %v1589_v32 }
 0x270   :  { %1797 = vmatpush.msrb.mxu3 %v3510_v21  ;;  %1764 = vmatpush.msrb.mxu2 %v1595_v11 }
 0x272   :  { %1799 = vmatpush.msrb.mxu3 %v3520_v49  ;;  %1768 = vmatpush.msrb.mxu2 %v1601_v41  ;;  %v3675_v41 = vand.u32 4294901760, %v1861_v37 }
 0x274   :  { %1801 = vmatpush.msrb.mxu3 %v3537_v34  ;;  %1772 = vmatpush.msrb.mxu2 %v1607_v2  ;;  %v3681_v2 = vsub.f32 %v1861_v37, %v3675_v41 }
 0x275   :  { %1863 = vmatpush.msra.mxu0 %v3675_v41 }
 0x276   :  { %1803 = vmatpush.msrb.mxu3 %v3550_v18  ;;  %v1905_v61 = vand.u32 4294901760, %v3681_v2 }
 0x277   :  { %1865 = vmatpush.msra.mxu0 %v3683_v3 }
 0x278   :  { %1805 = vmatpush.msrb.mxu3 %v3568_v55 }
 0x27a   :  { %1807 = vmatpush.msrb.mxu3 %v3585_v28 }
 0x27c   :  { %1809 = vmatpush.msrb.mxu3 %v3595_v22 }
 0x284   :  { %v1417_v48 = vpop.permute.xlu2 %1416 }
 0x285   :  { %vm1427_vm1 = vcmp.eq.s32.totalorder %v1417_v48, 1 }
 0x28c   :  { %v1420_v47 = vpop.permute.xlu2 %1419 }
 0x28d   :  { %vm1428_vm0 = vcmp.eq.s32.totalorder %v1420_v47, 1 }
 0x2ad   :  { %v1303_v16 = vpop.f32.mrf.mxu0 }
 0x2b5   :  { %v1305_v4 = vpop.f32.mrf.mxu0 }
 0x2b7   :  { %v1393_v29 = vpop.f32.mrf.mxu1 }
 0x2bd   :  { %v1308_v27 = vpop.f32.mrf.mxu0 }
 0x2be   :  { %v1236_v31 = vpop.f32.mrf.mxu3 }
 0x2bf   :  { %v1395_v17 = vpop.f32.mrf.mxu1  ;;  %v1304_v46 = vadd.f32 %v1303_v16, %v1236_v31  ;;  %v3694_v16 = vand.u32 4294901760, %v1859_v38  ;;  %v1906_v31 = vsub.f32 %v3681_v2, %v1905_v61 }
 0x2c1   :  { %v3656_v63 = vadd.f32 %v1393_v29, %v1304_v46  ;;  %v1858_v29 = vld [vmem:[%s3980_s9 + $0x60] sm:$0xff]  ;;  %v3707_v48 = vsub.f32 %v1859_v38, %v3694_v16  ;;  %1867 = vmatpush.msra.mxu0 %v3694_v16  ;;  %v1849_v38 = vld [vmem:[%s3980_s9 + $0x18] sm:$0xff] }
 0x2c3   :  { %v1431_v39 = vsel %vm1427_vm1, %v3656_v63, 0.0  ;;  %v1917_v46 = vand.u32 4294901760, %v3707_v48 }
 0x2c4   :  { %v1444_v21 = vmul.f32 %v1431_v39, %v1431_v39 }
 0x2c5   :  { %v1310_v5 = vpop.f32.mrf.mxu0  ;;  %v1918_v9 = vsub.f32 %v3707_v48, %v1917_v46 }
 0x2c6   :  { %v1238_v35 = vpop.f32.mrf.mxu3 }
 0x2c7   :  { %v1306_v62 = vadd.f32 %v1305_v4, %v1238_v35  ;;  %v1398_v59 = vpop.f32.mrf.mxu1  ;;  %v1911_v4 = vand.u32 4294901760, %v3692_v43  ;;  %v1857_v35 = vld [vmem:[%s3980_s9 + $0x58] sm:$0xff] }
 0x2c9   :  { %v3653_v60 = vadd.f32 %v1395_v17, %v1306_v62  ;;  %v3709_v17 = vand.u32 4294901760, %v1858_v29  ;;  %v1907_v62 = vand.u32 4294901760, %v1906_v31 }
 0x2cb   :  { %v1432_v33 = vsel %vm1428_vm0, %v3653_v60, 0.0  ;;  %v3722_v47 = vsub.f32 %v1858_v29, %v3709_v17  ;;  %1869 = vmatpush.msra.mxu0 %v3709_v17  ;;  %1908 = vmatpush.msra.mxu1 %v1907_v62  ;;  %v3839_v62 = vand.u32 4294901760, %v1849_v38 }
 0x2cc   :  { %v1445_v58 = vmul.f32 %v1432_v33, %v1432_v33  ;;  %v1435_v42 = vadd.f32 %v1432_v33, %v1431_v39 }
 0x2cd   :  { %v1923_v33 = vand.u32 4294901760, %v3722_v47 }
 0x2ce   :  { %v1241_v1 = vpop.f32.mrf.mxu3  ;;  %v1448_v34 = vadd.f32 %v1445_v58, %v1444_v21  ;;  %v1855_v58 = vld [vmem:[%s3980_s9 + $0x48] sm:$0xff] }
 0x2cf   :  { %v1309_v50 = vadd.f32 %v1308_v27, %v1241_v1  ;;  %v1400_v51 = vpop.f32.mrf.mxu1  ;;  %v1912_v27 = vsub.f32 %v3692_v43, %v1911_v4  ;;  %v1856_v1 = vld [vmem:[%s3980_s9 + $0x50] sm:$0xff] }
 0x2d0   :  { %v3736_v39 = vand.u32 4294901760, %v1856_v1 }
 0x2d1   :  { %v3658_v13 = vadd.f32 %v1398_v59, %v1309_v50  ;;  %v3726_v59 = vand.u32 4294901760, %v1857_v35  ;;  %v1913_v50 = vand.u32 4294901760, %v1912_v27 }
 0x2d2   :  { %v3751_v20 = vsub.f32 %v1856_v1, %v3736_v39  ;;  %v1848_v1 = vld [vmem:[%s3980_s9 + $0x10] sm:$0xff] }
 0x2d3   :  { %v1433_v40 = vsel %vm1429_vm2, %v3658_v13, 0.0  ;;  %1871 = vmatpush.msra.mxu0 %v3726_v59  ;;  %1914 = vmatpush.msra.mxu1 %v1913_v50 }
 0x2d4   :  { %v1446_v49 = vmul.f32 %v1433_v40, %v1433_v40  ;;  %v1436_v36 = vadd.f32 %v1435_v42, %v1433_v40  ;;  %v3740_v40 = vsub.f32 %v1857_v35, %v3726_v59  ;;  %v1854_v42 = vld [vmem:[%s3980_s9 + $0x40] sm:$0xff] }
 0x2d5   :  { %1873 = vmatpush.msra.mxu0 %v3736_v39 }
 0x2d6   :  { %v1243_v10 = vpop.f32.mrf.mxu3  ;;  %v1449_v12 = vadd.f32 %v1448_v34, %v1446_v49  ;;  %v1929_v21 = vand.u32 4294901760, %v3740_v40 }
 0x2d7   :  { %v1311_v15 = vadd.f32 %v1310_v5, %v1243_v10  ;;  %v1919_v5 = vand.u32 4294901760, %v1918_v9  ;;  %v1924_v10 = vsub.f32 %v3722_v47, %v1923_v33 }
 0x2d9   :  { %v3667_v7 = vadd.f32 %v1400_v51, %v1311_v15  ;;  %v3753_v15 = vand.u32 4294901760, %v1855_v58  ;;  %1920 = vmatpush.msra.mxu1 %v1919_v5  ;;  %v1925_v49 = vand.u32 4294901760, %v1924_v10  ;;  %v1935_v51 = vand.u32 4294901760, %v3751_v20 }
 0x2da   :  { %v3857_v5 = vand.u32 4294901760, %v1848_v1 }
 0x2db   :  { %v1434_v6 = vsel %vm1430_vm3, %v3667_v7, 0.0  ;;  %v3763_v34 = vsub.f32 %v1855_v58, %v3753_v15  ;;  %1875 = vmatpush.msra.mxu0 %v3753_v15  ;;  %1926 = vmatpush.msra.mxu1 %v1925_v49  ;;  %v3855_v58 = vsub.f32 %v1849_v38, %v3839_v62 }
 0x2dc   :  { %v1437_v18 = vadd.f32 %v1436_v36, %v1434_v6  ;;  %v1447_v44 = vmul.f32 %v1434_v6, %v1434_v6  ;;  %v3765_v36 = vand.u32 4294901760, %v1854_v42  ;;  %v1930_v6 = vsub.f32 %v3740_v40, %v1929_v21 }
 0x2de   :  { %v1438_v14 = vrot.slane %v1437_v18, 4  ;;  %v1450_v19 = vadd.f32 %v1449_v12, %v1447_v44  ;;  %v1853_v12 = vld [vmem:[%s3980_s9 + $0x38] sm:$0xff]  ;;  %v1941_v44 = vand.u32 4294901760, %v3763_v34  ;;  %1877 = vmatpush.msra.mxu0 %v3765_v36 }
 0x2e0   :  { %v1439_v25 = vadd.f32 %v1438_v14, %v1437_v18  ;;  %v1451_v55 = vrot.slane %v1450_v19, 4  ;;  %v1936_v18 = vsub.f32 %v3751_v20, %v1935_v51  ;;  %v3781_v14 = vsub.f32 %v1854_v42, %v3765_v36  ;;  %v1847_v42 = vld [vmem:[%s3980_s9 + $0x8] sm:$0xff] }
 0x2e2   :  { %v1440_v0 = vrot.slane %v1439_v25, 2  ;;  %v1452_v30 = vadd.f32 %v1451_v55, %v1450_v19  ;;  %v3783_v19 = vand.u32 4294901760, %v1853_v12  ;;  %v1852_v55 = vld [vmem:[%s3980_s9 + $0x30] sm:$0xff] }
 0x2e4   :  { %v1441_v56 = vadd.f32 %v1440_v0, %v1439_v25  ;;  %v1453_v8 = vrot.slane %v1452_v30, 2  ;;  %v1931_v25 = vand.u32 4294901760, %v1930_v6  ;;  %v1937_v0 = vand.u32 4294901760, %v1936_v18  ;;  %1879 = vmatpush.msra.mxu0 %v3783_v19 }
 0x2e5   :  { %v3870_v18 = vsub.f32 %v1848_v1, %v3857_v5 }
 0x2e6   :  { %v1442_v32 = vrot.slane %v1441_v56, 1  ;;  %v1454_v26 = vadd.f32 %v1453_v8, %v1452_v30  ;;  %v1942_v30 = vsub.f32 %v3763_v34, %v1941_v44  ;;  %v3796_v8 = vsub.f32 %v1853_v12, %v3783_v19  ;;  %1932 = vmatpush.msra.mxu1 %v1931_v25 }
 0x2e7   :  { %v1977_v12 = vand.u32 4294901760, %v3855_v58  ;;  %v3874_v25 = vand.u32 4294901760, %v1847_v42 }
 0x2e8   :  { %v1455_v28 = vrot.slane %v1454_v26, 1  ;;  %v1443_v45 = vadd.f32 %v1442_v32, %v1441_v56  ;;  %v1947_v56 = vand.u32 4294901760, %v3781_v14  ;;  %v3799_v32 = vand.u32 4294901760, %v1852_v55  ;;  %1938 = vmatpush.msra.mxu1 %v1937_v0 }
 0x2ea   :  { %v1456_v53 = vadd.f32 %v1455_v28, %v1454_v26  ;;  %v1851_v26 = vld [vmem:[%s3980_s9 + $0x28] sm:$0xff]  ;;  %v1943_v28 = vand.u32 4294901760, %v1942_v30  ;;  %1881 = vmatpush.msra.mxu0 %v3799_v32  ;;  %v1978_v30 = vsub.f32 %v3855_v58, %v1977_v12 }
 0x2ec   :  { %v1457_v54 = vsel %vm368_vm10, %v1443_v45, %v1456_v53  ;;  %v1948_v45 = vsub.f32 %v3781_v14, %v1947_v56  ;;  %v1953_v53 = vand.u32 4294901760, %v3796_v8  ;;  %1944 = vmatpush.msra.mxu1 %v1943_v28 }
 0x2ed   :  { %v1506_v11 = vand.u32 4294901760, %v1457_v54 }
 0x2ef   :  { %1612 = vmatmul.f32.vlgmr.msra.gmra.mxu3 %v1506_v11  ;;  %v1507_v22 = vsub.f32 %v1457_v54, %v1506_v11  ;;  %v3809_v54 = vand.u32 4294901760, %v1851_v26 }
 0x2f0   :  { %2059 = vmatpush.msra.mxu3 %v3675_v41 }
 0x2f1   :  { %1666 = vmatmul.f32.vlgmr.msrb.gmra.mxu0 %v1507_v22  ;;  %v1508_v23 = vand.u32 4294901760, %v1507_v22 }
 0x2f2   :  { %2061 = vmatpush.msra.mxu3 %v3683_v3  ;;  %1883 = vmatpush.msra.mxu0 %v3809_v54 }
 0x2f3   :  { %1705 = vmatmul.f32.vlgmr.msrb.gmra.mxu1 %v1508_v23  ;;  %v1509_v24 = vsub.f32 %v1507_v22, %v1508_v23  ;;  %v1850_v22 = vld [vmem:[%s3980_s9 + $0x20] sm:$0xff]  ;;  %v1949_v23 = vand.u32 4294901760, %v1948_v45  ;;  %v3889_v45 = vsub.f32 %v1847_v42, %v3874_v25 }
 0x2f4   :  { %2063 = vmatpush.msra.mxu3 %v3694_v16  ;;  %v3826_v37 = vand.u32 4294901760, %v1850_v22 }
 0x2f5   :  { %v1510_v52 = vand.u32 4294901760, %v1509_v24  ;;  %v1954_v24 = vsub.f32 %v3796_v8, %v1953_v53  ;;  %1950 = vmatpush.msra.mxu1 %v1949_v23  ;;  %v1989_v38 = vand.u32 4294901760, %v3889_v45 }
 0x2f6   :  { %2065 = vmatpush.msra.mxu3 %v3709_v17  ;;  %v3837_v35 = vsub.f32 %v1850_v22, %v3826_v37  ;;  %1885 = vmatpush.msra.mxu0 %v3826_v37  ;;  %v1979_v22 = vand.u32 4294901760, %v1978_v30 }
 0x2f7   :  { %1511 = vmatmul.f32.vlgmr.msra.gmra.mxu2 %v1510_v52  ;;  %1811 = vmatmul.f32.vlgmr.msrb.gmra.mxu3 %v1506_v11  ;;  %v3824_v52 = vsub.f32 %v1851_v26, %v3809_v54  ;;  %v1955_v29 = vand.u32 4294901760, %v1954_v24  ;;  %v1983_v26 = vand.u32 4294901760, %v3870_v18  ;;  %v1990_v1 = vsub.f32 %v3889_v45, %v1989_v38 }
 0x2f8   :  { %2006 = vmatpush.msra.mxu2 %v3681_v2  ;;  %2067 = vmatpush.msra.mxu3 %v3726_v59  ;;  %v1971_v9 = vand.u32 4294901760, %v3837_v35 }
 0x2f9   :  { %v1965_v31 = vand.u32 4294901760, %v3824_v52  ;;  %1956 = vmatpush.msra.mxu1 %v1955_v29  ;;  %1887 = vmatpush.msra.mxu0 %v3839_v62  ;;  %v1984_v23 = vsub.f32 %v3870_v18, %v1983_v26 }
 0x2fa   :  { %2009 = vmatpush.msra.mxu2 %v3692_v43  ;;  %2069 = vmatpush.msra.mxu3 %v3736_v39  ;;  %v1972_v6 = vsub.f32 %v3837_v35, %v1971_v9 }
 0x2fb   :  { %v1966_v50 = vsub.f32 %v3824_v52, %v1965_v31  ;;  %1889 = vmatpush.msra.mxu0 %v3857_v5  ;;  %v1985_v29 = vand.u32 4294901760, %v1984_v23 }
 0x2fc   :  { %2012 = vmatpush.msra.mxu2 %v3707_v48  ;;  %2071 = vmatpush.msra.mxu3 %v3753_v15  ;;  %v1973_v0 = vand.u32 4294901760, %v1972_v6 }
 0x2fd   :  { %v1967_v49 = vand.u32 4294901760, %v1966_v50  ;;  %1891 = vmatpush.msra.mxu0 %v3874_v25 }
 0x2fe   :  { %2015 = vmatpush.msra.mxu2 %v3722_v47  ;;  %2073 = vmatpush.msra.mxu3 %v3765_v36 }
 0x2ff   :  { %1774 = vmatmul.f32.vlgmr.msrb.gmra.mxu2 %v1506_v11  ;;  %v3814_v11 = vsub.f32 %v1852_v55, %v3799_v32  ;;  %v1846_v55 = vld [vmem:[%s3980_s9] sm:$0xff] }
 0x300   :  { %2018 = vmatpush.msra.mxu2 %v3740_v40  ;;  %2075 = vmatpush.msra.mxu3 %v3783_v19  ;;  %v3884_v28 = vand.u32 4294901760, %v1846_v55 }
 0x301   :  { %v1959_v57 = vand.u32 4294901760, %v3814_v11 }
 0x302   :  { %2021 = vmatpush.msra.mxu2 %v3751_v20  ;;  %2077 = vmatpush.msra.mxu3 %v3799_v32  ;;  %v1994_v24 = vsub.f32 %v1846_v55, %v3884_v28 }
 0x303   :  { %v1960_v27 = vsub.f32 %v3814_v11, %v1959_v57  ;;  %1893 = vmatpush.msra.mxu0 %v3884_v28 }
 0x304   :  { %2024 = vmatpush.msra.mxu2 %v3763_v34  ;;  %2079 = vmatpush.msra.mxu3 %v3809_v54 }
 0x305   :  { %v1961_v10 = vand.u32 4294901760, %v1960_v27  ;;  %v1995_v27 = vand.u32 4294901760, %v1994_v24  ;;  %2100 = vmatpush.msrb.mxu0 %v1905_v61 }
 0x306   :  { %2027 = vmatpush.msra.mxu2 %v3781_v14  ;;  %2081 = vmatpush.msra.mxu3 %v3826_v37 }
 0x307   :  { %1962 = vmatpush.msra.mxu1 %v1961_v10  ;;  %v1996_v50 = vsub.f32 %v1994_v24, %v1995_v27  ;;  %2104 = vmatpush.msrb.mxu0 %v1911_v4  ;;  %v1991_v10 = vand.u32 4294901760, %v1990_v1 }
 0x308   :  { %2030 = vmatpush.msra.mxu2 %v3796_v8  ;;  %2083 = vmatpush.msra.mxu3 %v3839_v62  ;;  %v1836_v8 = vld [vmem:[%s3981_s11] sm:$0x1] }
 0x309   :  { %1968 = vmatpush.msra.mxu1 %v1967_v49  ;;  %v1997_v42 = vand.u32 4294901760, %v1996_v50  ;;  %2108 = vmatpush.msrb.mxu0 %v1917_v46 }
 0x30a   :  { %2033 = vmatpush.msra.mxu2 %v3814_v11  ;;  %2085 = vmatpush.msra.mxu3 %v3857_v5 }
 0x30b   :  { %1974 = vmatpush.msra.mxu1 %v1973_v0  ;;  %2112 = vmatpush.msrb.mxu0 %v1923_v33 }
 0x30c   :  { %2036 = vmatpush.msra.mxu2 %v3824_v52  ;;  %2087 = vmatpush.msra.mxu3 %v3874_v25 }
 0x30d   :  { %1980 = vmatpush.msra.mxu1 %v1979_v22  ;;  %2116 = vmatpush.msrb.mxu0 %v1929_v21 }
 0x30e   :  { %2039 = vmatpush.msra.mxu2 %v3837_v35  ;;  %2089 = vmatpush.msra.mxu3 %v3884_v28 }
 0x30f   :  { %1986 = vmatpush.msra.mxu1 %v1985_v29  ;;  %2120 = vmatpush.msrb.mxu0 %v1935_v51 }
 0x310   :  { %2042 = vmatpush.msra.mxu2 %v3855_v58 }
 0x311   :  { %1992 = vmatpush.msra.mxu1 %v1991_v10  ;;  %2124 = vmatpush.msrb.mxu0 %v1941_v44 }
 0x312   :  { %2045 = vmatpush.msra.mxu2 %v3870_v18 }
 0x313   :  { %1998 = vmatpush.msra.mxu1 %v1997_v42  ;;  %2128 = vmatpush.msrb.mxu0 %v1947_v56 }
 0x314   :  { %2048 = vmatpush.msra.mxu2 %v3889_v45 }
 0x315   :  { %2167 = vmatpush.msrb.mxu1 %v3675_v41  ;;  %2132 = vmatpush.msrb.mxu0 %v1953_v53 }
 0x316   :  { %2051 = vmatpush.msra.mxu2 %v1994_v24 }
 0x317   :  { %2169 = vmatpush.msrb.mxu1 %v3683_v3  ;;  %2136 = vmatpush.msrb.mxu0 %v1959_v57 }
 0x319   :  { %2171 = vmatpush.msrb.mxu1 %v3694_v16  ;;  %2140 = vmatpush.msrb.mxu0 %v1965_v31 }
 0x31b   :  { %2173 = vmatpush.msrb.mxu1 %v3709_v17  ;;  %2144 = vmatpush.msrb.mxu0 %v1971_v9 }
 0x31d   :  { %2175 = vmatpush.msrb.mxu1 %v3726_v59  ;;  %2148 = vmatpush.msrb.mxu0 %v1977_v12 }
 0x31f   :  { %2177 = vmatpush.msrb.mxu1 %v3736_v39  ;;  %2152 = vmatpush.msrb.mxu0 %v1983_v26 }
 0x321   :  { %2179 = vmatpush.msrb.mxu1 %v3753_v15  ;;  %2156 = vmatpush.msrb.mxu0 %v1989_v38 }
 0x323   :  { %2181 = vmatpush.msrb.mxu1 %v3765_v36  ;;  %2160 = vmatpush.msrb.mxu0 %v1995_v27  ;;  %v2535_v36 = vld [vmem:[%s3979_s10] ss:$0 sm:$0xff] }
 0x325   :  { %2183 = vmatpush.msrb.mxu1 %v3783_v19 }
 0x327   :  { %2185 = vmatpush.msrb.mxu1 %v3799_v32 }
 0x329   :  { %2187 = vmatpush.msrb.mxu1 %v3809_v54 }
 0x32b   :  { %2189 = vmatpush.msrb.mxu1 %v3826_v37 }
 0x32d   :  { %2191 = vmatpush.msrb.mxu1 %v3839_v62 }
 0x32f   :  { %2193 = vmatpush.msrb.mxu1 %v3857_v5 }
 0x331   :  { %2195 = vmatpush.msrb.mxu1 %v3874_v25 }
 0x333   :  { %2197 = vmatpush.msrb.mxu1 %v3884_v28 }
 0x36e   :  { %v1667_v4 = vpop.f32.mrf.mxu0 }
 0x370   :  { %v1706_v46 = vpop.f32.mrf.mxu1 }
 0x372   :  { %v1613_v2 = vpop.f32.mrf.mxu3 }
 0x37a   :  { %v1512_v61 = vpop.f32.mrf.mxu2  ;;  %v1812_v33 = vpop.f32.mrf.mxu3 }
 0x37b   :  { %v1614_v43 = vadd.f32 %v1613_v2, %v1512_v61 }
 0x37d   :  { %v1668_v48 = vadd.f32 %v1667_v4, %v1614_v43 }
 0x37f   :  { %v1707_v41 = vadd.f32 %v1706_v46, %v1668_v48 }
 0x382   :  { %v1775_v47 = vpop.f32.mrf.mxu2 }
 0x383   :  { %v1776_v3 = vadd.f32 %v1775_v47, %v1707_v41 }
 0x385   :  { %v1813_v16 = vadd.f32 %v1812_v33, %v1776_v3 }
 0x387   :  { %v1815_v17 = vmul.f32 %v1813_v16, %v1813_v16 }
 0x389   :  { %v1817_v59 = vrot.slane %v1815_v17, 7 }
 0x38b   :  { %v1819_v39 = vsub.f32 %v1813_v16, %v1817_v59 }
 0x38d   :  { %v1820_v40 = vadd.f32 1e-05, %v1819_v39 }
 0x38f   :  { %2538 = vrsqrt.f32 %v1820_v40  ;;  %vm1827_vm5 = vweird.f32 %v1820_v40 }
 0x395   :  { %v2539_v20 = vpop.eup %2538 }
 0x396   :  { %v1822_v15 = vmul.f32 %v2539_v20, %v1820_v40  ;;  %vm1828_vm4 = vweird.f32 %v2539_v20 }
 0x397   :  { %vm1829_vm6 = vmor %vm1827_vm5, %vm1828_vm4 }
 0x398   :  { %v1823_v21 = vmul.f32 %v2539_v20, %v1822_v15 }
 0x39a   :  { %v1824_v51 = vmul.f32 0.5, %v1823_v21 }
 0x39c   :  { %v1825_v34 = vsub.f32 1.5, %v1824_v51 }
 0x39e   :  { %v1826_v44 = vmul.f32 %v2539_v20, %v1825_v34 }
 0x3a0   :  { %v1830_v14 = vsel %vm1829_vm6, %v2539_v20, %v1826_v44 }
 0x3a1   :  { %v1835_v19 = vmul.f32 %v2535_v36, %v1830_v14 }
 0x3a3   :  { %v1838_v56 = vrot.slane %v1835_v19, 1 }
 0x3a5   :  { %v1840_v32 = vmul.f32 %v1838_v56, %v1813_v16 }
 0x3a7   :  { %v1841_v53 = vsub.f32 %v1836_v8, %v1840_v32 }
 0x3a9   :  { %v1843_v54 = vperm.slane %v1841_v53, 0 }
 0x3ab   :  { %v1845_v11 = vsel %vm368_vm10, %v1838_v56, %v1843_v54 }
 0x3ac   :  { %v1894_v52 = vand.u32 4294901760, %v1845_v11 }
 0x3ae   :  { %2000 = vmatmul.f32.vlgmr.msra.gmra.mxu1 %v1894_v52  ;;  %v1895_v37 = vsub.f32 %v1845_v11, %v1894_v52 }
 0x3b0   :  { %2054 = vmatmul.f32.vlgmr.msra.gmra.mxu2 %v1895_v37  ;;  %v1896_v57 = vand.u32 4294901760, %v1895_v37 }
 0x3b2   :  { %2093 = vmatmul.f32.vlgmr.msra.gmra.mxu3 %v1896_v57  ;;  %v1897_v31 = vsub.f32 %v1895_v37, %v1896_v57 }
 0x3b4   :  { %v1898_v35 = vand.u32 4294901760, %v1897_v31 }
 0x3b6   :  { %1899 = vmatmul.f32.vlgmr.msra.gmra.mxu0 %v1898_v35  ;;  %2199 = vmatmul.f32.vlgmr.msrb.gmra.mxu1 %v1894_v52 }
 0x3be   :  { %2162 = vmatmul.f32.vlgmr.msrb.gmra.mxu0 %v1894_v52 }
 0x42b   :  { %v2001_v62 = vpop.f32.mrf.mxu1 }
 0x433   :  { %v1900_v9 = vpop.f32.mrf.mxu0  ;;  %v2055_v5 = vpop.f32.mrf.mxu2 }
 0x434   :  { %v2002_v58 = vadd.f32 %v2001_v62, %v1900_v9  ;;  %v2200_v55 = vpop.f32.mrf.mxu1 }
 0x435   :  { %v2094_v6 = vpop.f32.mrf.mxu3 }
 0x436   :  { %v2056_v49 = vadd.f32 %v2055_v5, %v2002_v58 }
 0x438   :  { %v2095_v12 = vadd.f32 %v2094_v6, %v2056_v49 }
 0x43b   :  { %v2163_v18 = vpop.f32.mrf.mxu0 }
 0x43c   :  { %v2164_v25 = vadd.f32 %v2163_v18, %v2095_v12 }
 0x43e   :  { %v2201_v0 = vadd.f32 %v2200_v55, %v2164_v25 }
 0x440   :  { %v2203_v30 = vperm.slane %v2201_v0, 0  ;;  %v2208_v26 = vperm.slane %v2201_v0, 1 }
 0x442   :  { %v2204_v28 = vmul.f32 %v2203_v30, %v3656_v63  ;;  %v2205_v45 = vmul.f32 %v2203_v30, %v3653_v60  ;;  %v2206_v22 = vmul.f32 %v2203_v30, %v3658_v13  ;;  %v2207_v23 = vmul.f32 %v2203_v30, %v3667_v7 }
 0x444   :  { %v2209_v24 = vadd.f32 %v2208_v26, %v2204_v28  ;;  %v2210_v38 = vadd.f32 %v2208_v26, %v2205_v45  ;;  %v2211_v29 = vadd.f32 %v2208_v26, %v2206_v22  ;;  %v2212_v27 = vadd.f32 %v2208_v26, %v2207_v23 }
 0x446   :  { %v2213_v1 = vmax.f32 %v2209_v24, 0.0  ;;  %v2214_v50 = vmax.f32 %v2210_v38, 0.0  ;;  %v2215_v10 = vmax.f32 %v2211_v29, 0.0  ;;  %v2216_v42 = vmax.f32 %v2212_v27, 0.0 }
 0x448   :  { %2217 = vst [vmem:[%s3982_s12] sm:$0xff] %v2213_v1 }
 0x449   :  { %2218 = vst [vmem:[%s3982_s12 + $0x8] sm:$0xff] %v2214_v50 }
 0x44a   :  { %2219 = vst [vmem:[%s3982_s12 + $0x10] sm:$0xff] %v2215_v10 }
 0x44b   :  { %2220 = vst [vmem:[%s3982_s12 + $0x18] sm:$0xff] %v2216_v42 }

</bundles_post_ra>
